<compile_context>
chip_gen: v7x
topology: tpu7x:2x2x1
jax: 0.10.0
libtpu: 0.0.40
codegen_flags: <defaults>
</compile_context>

<pallas_src>
import functools

import jax
import jax.numpy as jnp
from jax.experimental import pallas as pl
from jax.experimental.pallas import tpu as pltpu

_BN_EPS = 1e-5
_VMEM_LIMIT = 32 * 1024 * 1024  # safe on v5e/v6e/v7x scoped-VMEM budgets


def _round_up(x, m):
    return (x + m - 1) // m * m


def _pick_tile(s):
    for t in (512, 256, 128, 64, 32, 16, 8):
        if t <= s and s % t == 0:
            return t
    return s


# ----------------------------------------------------------------------------
# Kernel 1: conv stem (im2col matmul) + ReLU + global-average-pool, fused
# ----------------------------------------------------------------------------
def _conv_gap_kernel(p_ref, w_ref, o_ref, acc_ref, *, inv_hw):
    s = pl.program_id(1)

    @pl.when(s == 0)
    def _init():
        acc_ref[...] = jnp.zeros_like(acc_ref)

    p = p_ref[...]                                   # [B, tile_s, Kpad] bf16
    b, ts, kp = p.shape
    y = jnp.dot(p.reshape(b * ts, kp), w_ref[...],
                preferred_element_type=jnp.float32)  # [B*tile_s, F] f32
    y = jnp.maximum(y, 0.0)
    acc_ref[...] += y.reshape(b, ts, -1).sum(axis=1)

    @pl.when(s == pl.num_programs(1) - 1)
    def _fin():
        o_ref[...] = acc_ref[...] * inv_hw


def conv_relu_gap(patches, conv_w):
    """patches: [V, B, S, Kpad] bf16, conv_w: [Kpad, F] bf16
       -> GAP(relu(patches @ conv_w)) : [V, B, F] f32."""
    V, B, S, Kpad = patches.shape
    F = conv_w.shape[1]
    tile_s = _pick_tile(S)
    kern = functools.partial(_conv_gap_kernel, inv_hw=1.0 / S)
    return pl.pallas_call(
        kern,
        out_shape=jax.ShapeDtypeStruct((V, B, F), jnp.float32),
        grid_spec=pltpu.PrefetchScalarGridSpec(
            num_scalar_prefetch=0,
            grid=(V, S // tile_s),
            in_specs=[
                pl.BlockSpec((None, B, tile_s, Kpad),
                             lambda v, s: (v, 0, s, 0)),
                pl.BlockSpec((Kpad, F), lambda v, s: (0, 0)),  # resident
            ],
            out_specs=pl.BlockSpec((None, B, F), lambda v, s: (v, 0, 0)),
            scratch_shapes=[pltpu.VMEM((B, F), jnp.float32)],
        ),
        compiler_params=pltpu.CompilerParams(
            dimension_semantics=("parallel", "arbitrary"),
            vmem_limit_bytes=_VMEM_LIMIT),
    )(patches, conv_w)


# ----------------------------------------------------------------------------
# Kernel 2: projection MLP + predictor, fully fused (one call per forward)
# ----------------------------------------------------------------------------
def _head_kernel(h_ref, pw1, pg1, pb1, pw2, pg2, pb2, pw3, pbias3,
                 qw1, qg1, qb1, qw2, qbias2, z_ref, p_ref, *, eps):
    def bn(y, g=None, b=None):
        # training-mode BatchNorm1d: batch mean, biased variance, f32 math
        mean = jnp.mean(y, axis=0, keepdims=True)
        var = jnp.mean((y - mean) ** 2, axis=0, keepdims=True)
        y = (y - mean) * jax.lax.rsqrt(var + eps)
        if g is not None:
            y = y * g[...] + b[...]
        return y

    def mm(x, w):
        # bf16 MXU feed, f32 accumulation
        return jnp.dot(x.astype(jnp.bfloat16), w[...],
                       preferred_element_type=jnp.float32)

    h = h_ref[...]                                   # [B, prev_dim] f32
    # projection head (encoder.fc replacement)
    h = jnp.maximum(bn(mm(h, pw1), pg1, pb1), 0.0)   # Linear(no bias)+BN+ReLU
    h = jnp.maximum(bn(mm(h, pw2), pg2, pb2), 0.0)   # Linear(no bias)+BN+ReLU
    z = bn(mm(h, pw3) + pbias3[...])                 # Linear(bias)+BN(affine=False)
    z_ref[...] = z
    # predictor; 64-wide hidden stays in VMEM/vregs, never written to HBM
    q = jnp.maximum(bn(mm(z, qw1), qg1, qb1), 0.0)   # Linear(no bias)+BN+ReLU
    p_ref[...] = mm(q, qw2) + qbias2[...]            # Linear(bias)


def head_forward(params, h):
    """h: [V, B, prev_dim] f32 -> (z, p) each [V, B, dim] f32."""
    V, B, prev_dim = h.shape
    dim = params["proj_w3"].shape[1]
    kern = functools.partial(_head_kernel, eps=_BN_EPS)

    def resident(arr):  # full-array block, same index every step -> resident
        return pl.BlockSpec(arr.shape, lambda v: (0,) * arr.ndim)

    weights = [params[k] for k in (
        "proj_w1", "proj_g1", "proj_b1", "proj_w2", "proj_g2", "proj_b2",
        "proj_w3", "proj_bias3", "pred_w1", "pred_g1", "pred_b1",
        "pred_w2", "pred_bias2")]

    z, p = pl.pallas_call(
        kern,
        out_shape=(jax.ShapeDtypeStruct((V, B, dim), jnp.float32),
                   jax.ShapeDtypeStruct((V, B, dim), jnp.float32)),
        grid_spec=pltpu.PrefetchScalarGridSpec(
            num_scalar_prefetch=0,
            grid=(V,),
            in_specs=[pl.BlockSpec((None, B, prev_dim), lambda v: (v, 0, 0))]
                     + [resident(w) for w in weights],
            out_specs=[pl.BlockSpec((None, B, dim), lambda v: (v, 0, 0)),
                       pl.BlockSpec((None, B, dim), lambda v: (v, 0, 0))],
        ),
        compiler_params=pltpu.CompilerParams(
            dimension_semantics=("parallel",),
            vmem_limit_bytes=_VMEM_LIMIT),
    )(h, *weights)
    return z, p


# ----------------------------------------------------------------------------
# Glue: im2col, parameter init, model forward
# ----------------------------------------------------------------------------
def im2col(x, k=3, pad=1):
    """NCHW -> [B, H*W, C*k*k] patches (stride 1, same padding)."""
    # TODO(synk): at real image resolutions replace with lax.conv or an
    # in-kernel shift-and-accumulate to avoid the 9x HBM materialization.
    B, C, H, W = x.shape
    xp = jnp.pad(x, ((0, 0), (0, 0), (pad, pad), (pad, pad)))
    cols = []
    for di in range(k):
        for dj in range(k):
            cols.append(xp[:, :, di:di + H, dj:dj + W])
    patches = jnp.stack(cols, axis=0)                 # [k*k, B, C, H, W]
    patches = patches.transpose(1, 3, 4, 2, 0)        # [B, H, W, C, k*k]
    return patches.reshape(B, H * W, C * k * k)


def init_params(key, C, prev_dim, dim, pred_dim, k=3):
    ks = jax.random.split(key, 8)
    s = 0.05
    kk = C * k * k
    kpad = _round_up(kk, 128)                         # lane-dense contraction dim
    conv_w = s * jax.random.normal(ks[0], (kk, prev_dim), jnp.float32)
    conv_w = jnp.pad(conv_w, ((0, kpad - kk), (0, 0)))

    def w(kx, shape):
        return (s * jax.random.normal(kx, shape, jnp.float32)).astype(jnp.bfloat16)

    return {
        # synthetic backbone stem
        "conv_w": conv_w.astype(jnp.bfloat16),
        # projection head (encoder.fc replacement)
        "proj_w1": w(ks[1], (prev_dim, prev_dim)),
        "proj_g1": jnp.ones((1, prev_dim), jnp.float32),
        "proj_b1": jnp.zeros((1, prev_dim), jnp.float32),
        "proj_w2": w(ks[2], (prev_dim, prev_dim)),
        "proj_g2": jnp.ones((1, prev_dim), jnp.float32),
        "proj_b2": jnp.zeros((1, prev_dim), jnp.float32),
        "proj_w3": w(ks[3], (prev_dim, dim)),
        "proj_bias3": s * jax.random.normal(ks[4], (1, dim), jnp.float32),
        # predictor
        "pred_w1": w(ks[5], (dim, pred_dim)),
        "pred_g1": jnp.ones((1, pred_dim), jnp.float32),
        "pred_b1": jnp.zeros((1, pred_dim), jnp.float32),
        "pred_w2": w(ks[6], (pred_dim, dim)),
        "pred_bias2": s * jax.random.normal(ks[7], (1, dim), jnp.float32),
    }


def simsiam_forward(params, x1, x2):
    B, C, H, W = x1.shape
    k = 3
    kpad = params["conv_w"].shape[0]
    # stack the two views on a leading axis -> parallel grid dim (2 TCs on
    # v7x); BN statistics in the head stay per-view, as in the original.
    patches = jnp.stack([im2col(x1, k), im2col(x2, k)], axis=0)   # [2,B,S,C*9]
    patches = jnp.pad(patches,
                      ((0, 0), (0, 0), (0, 0), (0, kpad - C * k * k)))
    patches = patches.astype(jnp.bfloat16)

    h = conv_relu_gap(patches, params["conv_w"])                  # [2,B,prev]
    z, p = head_forward(params, h)                                # [2,B,dim] x2

    p1, p2 = p[0], p[1]
    z1, z2 = z[0], z[1]
    return p1, p2, jax.lax.stop_gradient(z1), jax.lax.stop_gradient(z2)


# ----------------------------------------------------------------------------
if __name__ == "__main__":
    B, C, H, W = 2, 4, 16, 16
    prev_dim, dim, pred_dim = 128, 128, 64

    key = jax.random.PRNGKey(0)
    k_x1, k_x2, k_p = jax.random.split(key, 3)
    x1 = jax.random.normal(k_x1, (B, C, H, W), jnp.float32)
    x2 = jax.random.normal(k_x2, (B, C, H, W), jnp.float32)
    params = init_params(k_p, C, prev_dim, dim, pred_dim)

    p1, p2, z1, z2 = jax.jit(simsiam_forward)(params, x1, x2)
    jax.block_until_ready((p1, p2, z1, z2))

    assert p1.shape == (B, dim) and p2.shape == (B, dim)
    assert z1.shape == (B, dim) and z2.shape == (B, dim)
    assert bool(jnp.all(jnp.isfinite(p1))) and bool(jnp.all(jnp.isfinite(z1)))
    print("KERNEL_OK")
</pallas_src>

<mosaic_0001>
module attributes {stable_mosaic.version = 11 : i64} {
  func.func @_conv_gap_kernel(%arg0: i32, %arg1: i32, %arg2: memref<1x2x256x128xbf16, #tpu.memory_space<vmem>>, %arg3: memref<128x128xbf16, #tpu.memory_space<vmem>>, %arg4: memref<1x2x128xf32, #tpu.memory_space<vmem>>, %arg5: memref<2x128xf32, #tpu.memory_space<vmem>>) attributes {dimension_semantics = [#tpu.dimension_semantics<parallel>, #tpu.dimension_semantics<arbitrary>], iteration_bounds = array<i64: 2, 1>, scalar_prefetch = 0 : i64, scratch_operands = 1 : i64, tpu.core_type = #tpu.core_type<tc>, window_params = [{transform_indices = @transform_0, window_bounds = array<i64: 1, 2, 256, 128>}, {pipeline_mode = #tpu.pipeline_mode<synchronous>, transform_indices = @transform_1, window_bounds = array<i64: 128, 128>}, {transform_indices = @transform_2, window_bounds = array<i64: 1, 2, 128>}]} {
    %c0_i32 = arith.constant 0 : i32
    %0 = arith.cmpi eq, %arg1, %c0_i32 : i32
    %1 = arith.extui %0 : i1 to i32
    %c0_i32_0 = arith.constant 0 : i32
    %2 = arith.cmpi ne, %1, %c0_i32_0 : i32
    scf.if %2 {
      %cst_14 = arith.constant 0.000000e+00 : f32
      %18 = vector.broadcast %cst_14 : f32 to vector<2x128xf32>
      %c0_15 = arith.constant 0 : index
      %c0_16 = arith.constant 0 : index
      %19 = vector.load %arg5[%c0_15, %c0_16] : memref<2x128xf32, #tpu.memory_space<vmem>>, vector<2x128xf32>
      tpu.vector_store %arg5[%c0_15, %c0_16], %18 {strides = array<i32>} : memref<2x128xf32, #tpu.memory_space<vmem>>, vector<2x128xf32>,
    } else {
    }
    %c0 = arith.constant 0 : index
    %c0_1 = arith.constant 0 : index
    %c0_2 = arith.constant 0 : index
    %c0_3 = arith.constant 0 : index
    %3 = vector.load %arg2[%c0, %c0_1, %c0_2, %c0_3] : memref<1x2x256x128xbf16, #tpu.memory_space<vmem>>, vector<1x2x256x128xbf16>
    %4 = vector.shape_cast %3 : vector<1x2x256x128xbf16> to vector<2x256x128xbf16>
    %5 = vector.shape_cast %4 : vector<2x256x128xbf16> to vector<512x128xbf16>
    %c0_4 = arith.constant 0 : index
    %c0_5 = arith.constant 0 : index
    %6 = vector.load %arg3[%c0_4, %c0_5] : memref<128x128xbf16, #tpu.memory_space<vmem>>, vector<128x128xbf16>
    %cst = arith.constant dense<0.000000e+00> : vector<512x128xf32>
    %7 = tpu.matmul %5, %6, %cst {dimension_numbers = #tpu.dot_dimension_numbers<[1], [0], [0], [1], [0, 0, 1, 1], [], []>} : vector<512x128xbf16>, vector<128x128xbf16>, vector<512x128xf32> -> vector<512x128xf32>
    %cst_6 = arith.constant 0.000000e+00 : f32
    %8 = vector.broadcast %cst_6 : f32 to vector<512x128xf32>
    %9 = arith.maximumf %7, %8 : vector<512x128xf32>
    %c0_7 = arith.constant 0 : index
    %c0_8 = arith.constant 0 : index
    %10 = vector.load %arg5[%c0_7, %c0_8] : memref<2x128xf32, #tpu.memory_space<vmem>>, vector<2x128xf32>
    %11 = vector.shape_cast %9 : vector<512x128xf32> to vector<2x256x128xf32>
    %cst_9 = arith.constant dense<0.000000e+00> : vector<2x128xf32>
    %12 = vector.multi_reduction <add>, %11, %cst_9 [1] : vector<2x256x128xf32> to vector<2x128xf32>
    %13 = arith.addf %10, %12 : vector<2x128xf32>
    %c0_10 = arith.constant 0 : index
    %c0_11 = arith.constant 0 : index
    %14 = vector.load %arg5[%c0_10, %c0_11] : memref<2x128xf32, #tpu.memory_space<vmem>>, vector<2x128xf32>
    tpu.vector_store %arg5[%c0_10, %c0_11], %13 {strides = array<i32>} : memref<2x128xf32, #tpu.memory_space<vmem>>, vector<2x128xf32>,
    %c0_i32_12 = arith.constant 0 : i32
    %15 = arith.cmpi eq, %arg1, %c0_i32_12 : i32
    %16 = arith.extui %15 : i1 to i32
    %c0_i32_13 = arith.constant 0 : i32
    %17 = arith.cmpi ne, %16, %c0_i32_13 : i32
    scf.if %17 {
      %c0_14 = arith.constant 0 : index
      %c0_15 = arith.constant 0 : index
      %18 = vector.load %arg5[%c0_14, %c0_15] : memref<2x128xf32, #tpu.memory_space<vmem>>, vector<2x128xf32>
      %cst_16 = arith.constant 3.906250e-03 : f32
      %19 = vector.broadcast %cst_16 : f32 to vector<2x128xf32>
      %20 = arith.mulf %18, %19 : vector<2x128xf32>
      %c0_17 = arith.constant 0 : index
      %c0_18 = arith.constant 0 : index
      %c0_19 = arith.constant 0 : index
      %21 = vector.load %arg4[%c0_17, %c0_18, %c0_19] : memref<1x2x128xf32, #tpu.memory_space<vmem>>, vector<1x2x128xf32>
      %22 = vector.shape_cast %21 : vector<1x2x128xf32> to vector<2x128xf32>
      %23 = vector.shape_cast %20 : vector<2x128xf32> to vector<1x2x128xf32>
      tpu.vector_store %arg4[%c0_17, %c0_18, %c0_19], %23 {strides = array<i32>} : memref<1x2x128xf32, #tpu.memory_space<vmem>>, vector<1x2x128xf32>,
    } else {
    }
    return
  }
  func.func @transform_0(%arg0: i32, %arg1: i32) -> (i32, i32, i32, i32) {
    %c0_i32 = arith.constant 0 : i32
    %c0_i32_0 = arith.constant 0 : i32
    %c0_i32_1 = arith.constant 0 : i32
    return %arg0, %c0_i32, %arg1, %c0_i32_0 : i32, i32, i32, i32
  }
  func.func @transform_1(%arg0: i32, %arg1: i32) -> (i32, i32) {
    %c0_i32 = arith.constant 0 : i32
    %c0_i32_0 = arith.constant 0 : i32
    %c0_i32_1 = arith.constant 0 : i32
    return %c0_i32, %c0_i32_0 : i32, i32
  }
  func.func @transform_2(%arg0: i32, %arg1: i32) -> (i32, i32, i32) {
    %c0_i32 = arith.constant 0 : i32
    %c0_i32_0 = arith.constant 0 : i32
    %c0_i32_1 = arith.constant 0 : i32
    return %arg0, %c0_i32, %c0_i32_0 : i32, i32, i32
  }
}

module attributes {stable_mosaic.version = 11 : i64} {
  func.func @_head_kernel(%arg0: i32, %arg1: memref<1x2x128xf32, #tpu.memory_space<vmem>>, %arg2: memref<128x128xbf16, #tpu.memory_space<vmem>>, %arg3: memref<1x128xf32, #tpu.memory_space<vmem>>, %arg4: memref<1x128xf32, #tpu.memory_space<vmem>>, %arg5: memref<128x128xbf16, #tpu.memory_space<vmem>>, %arg6: memref<1x128xf32, #tpu.memory_space<vmem>>, %arg7: memref<1x128xf32, #tpu.memory_space<vmem>>, %arg8: memref<128x128xbf16, #tpu.memory_space<vmem>>, %arg9: memref<1x128xf32, #tpu.memory_space<vmem>>, %arg10: memref<128x64xbf16, #tpu.memory_space<vmem>>, %arg11: memref<1x64xf32, #tpu.memory_space<vmem>>, %arg12: memref<1x64xf32, #tpu.memory_space<vmem>>, %arg13: memref<64x128xbf16, #tpu.memory_space<vmem>>, %arg14: memref<1x128xf32, #tpu.memory_space<vmem>>, %arg15: memref<1x2x128xf32, #tpu.memory_space<vmem>>, %arg16: memref<1x2x128xf32, #tpu.memory_space<vmem>>) attributes {dimension_semantics = [#tpu.dimension_semantics<parallel>], iteration_bounds = array<i64: 2>, scalar_prefetch = 0 : i64, scratch_operands = 0 : i64, tpu.core_type = #tpu.core_type<tc>, window_params = [{transform_indices = @transform_0, window_bounds = array<i64: 1, 2, 128>}, {pipeline_mode = #tpu.pipeline_mode<synchronous>, transform_indices = @transform_1, window_bounds = array<i64: 128, 128>}, {pipeline_mode = #tpu.pipeline_mode<synchronous>, transform_indices = @transform_2, window_bounds = array<i64: 1, 128>}, {pipeline_mode = #tpu.pipeline_mode<synchronous>, transform_indices = @transform_3, window_bounds = array<i64: 1, 128>}, {pipeline_mode = #tpu.pipeline_mode<synchronous>, transform_indices = @transform_4, window_bounds = array<i64: 128, 128>}, {pipeline_mode = #tpu.pipeline_mode<synchronous>, transform_indices = @transform_5, window_bounds = array<i64: 1, 128>}, {pipeline_mode = #tpu.pipeline_mode<synchronous>, transform_indices = @transform_6, window_bounds = array<i64: 1, 128>}, {pipeline_mode = #tpu.pipeline_mode<synchronous>, transform_indices = @transform_7, window_bounds = array<i64: 128, 128>}, {pipeline_mode = #tpu.pipeline_mode<synchronous>, transform_indices = @transform_8, window_bounds = array<i64: 1, 128>}, {pipeline_mode = #tpu.pipeline_mode<synchronous>, transform_indices = @transform_9, window_bounds = array<i64: 128, 64>}, {pipeline_mode = #tpu.pipeline_mode<synchronous>, transform_indices = @transform_10, window_bounds = array<i64: 1, 64>}, {pipeline_mode = #tpu.pipeline_mode<synchronous>, transform_indices = @transform_11, window_bounds = array<i64: 1, 64>}, {pipeline_mode = #tpu.pipeline_mode<synchronous>, transform_indices = @transform_12, window_bounds = array<i64: 64, 128>}, {pipeline_mode = #tpu.pipeline_mode<synchronous>, transform_indices = @transform_13, window_bounds = array<i64: 1, 128>}, {transform_indices = @transform_14, window_bounds = array<i64: 1, 2, 128>}, {transform_indices = @transform_15, window_bounds = array<i64: 1, 2, 128>}]} {
    %c0 = arith.constant 0 : index
    %c0_0 = arith.constant 0 : index
    %c0_1 = arith.constant 0 : index
    %0 = vector.load %arg1[%c0, %c0_0, %c0_1] : memref<1x2x128xf32, #tpu.memory_space<vmem>>, vector<1x2x128xf32>
    %1 = vector.shape_cast %0 : vector<1x2x128xf32> to vector<2x128xf32>
    %2 = arith.truncf %1 : vector<2x128xf32> to vector<2x128xbf16>
    %c0_2 = arith.constant 0 : index
    %c0_3 = arith.constant 0 : index
    %3 = vector.load %arg2[%c0_2, %c0_3] : memref<128x128xbf16, #tpu.memory_space<vmem>>, vector<128x128xbf16>
    %cst = arith.constant dense<0.000000e+00> : vector<2x128xf32>
    %4 = tpu.matmul %2, %3, %cst {dimension_numbers = #tpu.dot_dimension_numbers<[1], [0], [0], [1], [0, 0, 1, 1], [], []>} : vector<2x128xbf16>, vector<128x128xbf16>, vector<2x128xf32> -> vector<2x128xf32>
    %cst_4 = arith.constant dense<0.000000e+00> : vector<128xf32>
    %5 = vector.multi_reduction <add>, %4, %cst_4 [0] : vector<2x128xf32> to vector<128xf32>
    %6 = vector.shape_cast %5 : vector<128xf32> to vector<1x128xf32>
    %cst_5 = arith.constant 2.000000e+00 : f32
    %7 = vector.broadcast %cst_5 : f32 to vector<1x128xf32>
    %8 = arith.divf %6, %7 : vector<1x128xf32>
    %9 = vector.broadcast %8 : vector<1x128xf32> to vector<2x128xf32>
    %10 = arith.subf %4, %9 : vector<2x128xf32>
    %11 = arith.mulf %10, %10 : vector<2x128xf32>
    %cst_6 = arith.constant dense<0.000000e+00> : vector<128xf32>
    %12 = vector.multi_reduction <add>, %11, %cst_6 [0] : vector<2x128xf32> to vector<128xf32>
    %13 = vector.shape_cast %12 : vector<128xf32> to vector<1x128xf32>
    %cst_7 = arith.constant 2.000000e+00 : f32
    %14 = vector.broadcast %cst_7 : f32 to vector<1x128xf32>
    %15 = arith.divf %13, %14 : vector<1x128xf32>
    %16 = vector.broadcast %8 : vector<1x128xf32> to vector<2x128xf32>
    %17 = arith.subf %4, %16 : vector<2x128xf32>
    %cst_8 = arith.constant 9.99999974E-6 : f32
    %18 = vector.broadcast %cst_8 : f32 to vector<1x128xf32>
    %19 = arith.addf %15, %18 : vector<1x128xf32>
    %20 = math.rsqrt %19 : vector<1x128xf32>
    %21 = vector.broadcast %20 : vector<1x128xf32> to vector<2x128xf32>
    %22 = arith.mulf %17, %21 : vector<2x128xf32>
    %c0_9 = arith.constant 0 : index
    %c0_10 = arith.constant 0 : index
    %23 = vector.load %arg3[%c0_9, %c0_10] : memref<1x128xf32, #tpu.memory_space<vmem>>, vector<1x128xf32>
    %24 = vector.broadcast %23 : vector<1x128xf32> to vector<2x128xf32>
    %25 = arith.mulf %22, %24 : vector<2x128xf32>
    %c0_11 = arith.constant 0 : index
    %c0_12 = arith.constant 0 : index
    %26 = vector.load %arg4[%c0_11, %c0_12] : memref<1x128xf32, #tpu.memory_space<vmem>>, vector<1x128xf32>
    %27 = vector.broadcast %26 : vector<1x128xf32> to vector<2x128xf32>
    %28 = arith.addf %25, %27 : vector<2x128xf32>
    %cst_13 = arith.constant 0.000000e+00 : f32
    %29 = vector.broadcast %cst_13 : f32 to vector<2x128xf32>
    %30 = arith.maximumf %28, %29 : vector<2x128xf32>
    %31 = arith.truncf %30 : vector<2x128xf32> to vector<2x128xbf16>
    %c0_14 = arith.constant 0 : index
    %c0_15 = arith.constant 0 : index
    %32 = vector.load %arg5[%c0_14, %c0_15] : memref<128x128xbf16, #tpu.memory_space<vmem>>, vector<128x128xbf16>
    %cst_16 = arith.constant dense<0.000000e+00> : vector<2x128xf32>
    %33 = tpu.matmul %31, %32, %cst_16 {dimension_numbers = #tpu.dot_dimension_numbers<[1], [0], [0], [1], [0, 0, 1, 1], [], []>} : vector<2x128xbf16>, vector<128x128xbf16>, vector<2x128xf32> -> vector<2x128xf32>
    %cst_17 = arith.constant dense<0.000000e+00> : vector<128xf32>
    %34 = vector.multi_reduction <add>, %33, %cst_17 [0] : vector<2x128xf32> to vector<128xf32>
    %35 = vector.shape_cast %34 : vector<128xf32> to vector<1x128xf32>
    %cst_18 = arith.constant 2.000000e+00 : f32
    %36 = vector.broadcast %cst_18 : f32 to vector<1x128xf32>
    %37 = arith.divf %35, %36 : vector<1x128xf32>
    %38 = vector.broadcast %37 : vector<1x128xf32> to vector<2x128xf32>
    %39 = arith.subf %33, %38 : vector<2x128xf32>
    %40 = arith.mulf %39, %39 : vector<2x128xf32>
    %cst_19 = arith.constant dense<0.000000e+00> : vector<128xf32>
    %41 = vector.multi_reduction <add>, %40, %cst_19 [0] : vector<2x128xf32> to vector<128xf32>
    %42 = vector.shape_cast %41 : vector<128xf32> to vector<1x128xf32>
    %cst_20 = arith.constant 2.000000e+00 : f32
    %43 = vector.broadcast %cst_20 : f32 to vector<1x128xf32>
    %44 = arith.divf %42, %43 : vector<1x128xf32>
    %45 = vector.broadcast %37 : vector<1x128xf32> to vector<2x128xf32>
    %46 = arith.subf %33, %45 : vector<2x128xf32>
    %cst_21 = arith.constant 9.99999974E-6 : f32
    %47 = vector.broadcast %cst_21 : f32 to vector<1x128xf32>
    %48 = arith.addf %44, %47 : vector<1x128xf32>
    %49 = math.rsqrt %48 : vector<1x128xf32>
    %50 = vector.broadcast %49 : vector<1x128xf32> to vector<2x128xf32>
    %51 = arith.mulf %46, %50 : vector<2x128xf32>
    %c0_22 = arith.constant 0 : index
    %c0_23 = arith.constant 0 : index
    %52 = vector.load %arg6[%c0_22, %c0_23] : memref<1x128xf32, #tpu.memory_space<vmem>>, vector<1x128xf32>
    %53 = vector.broadcast %52 : vector<1x128xf32> to vector<2x128xf32>
    %54 = arith.mulf %51, %53 : vector<2x128xf32>
    %c0_24 = arith.constant 0 : index
    %c0_25 = arith.constant 0 : index
    %55 = vector.load %arg7[%c0_24, %c0_25] : memref<1x128xf32, #tpu.memory_space<vmem>>, vector<1x128xf32>
    %56 = vector.broadcast %55 : vector<1x128xf32> to vector<2x128xf32>
    %57 = arith.addf %54, %56 : vector<2x128xf32>
    %cst_26 = arith.constant 0.000000e+00 : f32
    %58 = vector.broadcast %cst_26 : f32 to vector<2x128xf32>
    %59 = arith.maximumf %57, %58 : vector<2x128xf32>
    %60 = arith.truncf %59 : vector<2x128xf32> to vector<2x128xbf16>
    %c0_27 = arith.constant 0 : index
    %c0_28 = arith.constant 0 : index
    %61 = vector.load %arg8[%c0_27, %c0_28] : memref<128x128xbf16, #tpu.memory_space<vmem>>, vector<128x128xbf16>
    %cst_29 = arith.constant dense<0.000000e+00> : vector<2x128xf32>
    %62 = tpu.matmul %60, %61, %cst_29 {dimension_numbers = #tpu.dot_dimension_numbers<[1], [0], [0], [1], [0, 0, 1, 1], [], []>} : vector<2x128xbf16>, vector<128x128xbf16>, vector<2x128xf32> -> vector<2x128xf32>
    %c0_30 = arith.constant 0 : index
    %c0_31 = arith.constant 0 : index
    %63 = vector.load %arg9[%c0_30, %c0_31] : memref<1x128xf32, #tpu.memory_space<vmem>>, vector<1x128xf32>
    %64 = vector.broadcast %63 : vector<1x128xf32> to vector<2x128xf32>
    %65 = arith.addf %62, %64 : vector<2x128xf32>
    %cst_32 = arith.constant dense<0.000000e+00> : vector<128xf32>
    %66 = vector.multi_reduction <add>, %65, %cst_32 [0] : vector<2x128xf32> to vector<128xf32>
    %67 = vector.shape_cast %66 : vector<128xf32> to vector<1x128xf32>
    %cst_33 = arith.constant 2.000000e+00 : f32
    %68 = vector.broadcast %cst_33 : f32 to vector<1x128xf32>
    %69 = arith.divf %67, %68 : vector<1x128xf32>
    %70 = vector.broadcast %69 : vector<1x128xf32> to vector<2x128xf32>
    %71 = arith.subf %65, %70 : vector<2x128xf32>
    %72 = arith.mulf %71, %71 : vector<2x128xf32>
    %cst_34 = arith.constant dense<0.000000e+00> : vector<128xf32>
    %73 = vector.multi_reduction <add>, %72, %cst_34 [0] : vector<2x128xf32> to vector<128xf32>
    %74 = vector.shape_cast %73 : vector<128xf32> to vector<1x128xf32>
    %cst_35 = arith.constant 2.000000e+00 : f32
    %75 = vector.broadcast %cst_35 : f32 to vector<1x128xf32>
    %76 = arith.divf %74, %75 : vector<1x128xf32>
    %77 = vector.broadcast %69 : vector<1x128xf32> to vector<2x128xf32>
    %78 = arith.subf %65, %77 : vector<2x128xf32>
    %cst_36 = arith.constant 9.99999974E-6 : f32
    %79 = vector.broadcast %cst_36 : f32 to vector<1x128xf32>
    %80 = arith.addf %76, %79 : vector<1x128xf32>
    %81 = math.rsqrt %80 : vector<1x128xf32>
    %82 = vector.broadcast %81 : vector<1x128xf32> to vector<2x128xf32>
    %83 = arith.mulf %78, %82 : vector<2x128xf32>
    %c0_37 = arith.constant 0 : index
    %c0_38 = arith.constant 0 : index
    %c0_39 = arith.constant 0 : index
    %84 = vector.load %arg15[%c0_37, %c0_38, %c0_39] : memref<1x2x128xf32, #tpu.memory_space<vmem>>, vector<1x2x128xf32>
    %85 = vector.shape_cast %84 : vector<1x2x128xf32> to vector<2x128xf32>
    %86 = vector.shape_cast %83 : vector<2x128xf32> to vector<1x2x128xf32>
    tpu.vector_store %arg15[%c0_37, %c0_38, %c0_39], %86 {strides = array<i32>} : memref<1x2x128xf32, #tpu.memory_space<vmem>>, vector<1x2x128xf32>,
    %87 = arith.truncf %83 : vector<2x128xf32> to vector<2x128xbf16>
    %c0_40 = arith.constant 0 : index
    %c0_41 = arith.constant 0 : index
    %88 = vector.load %arg10[%c0_40, %c0_41] : memref<128x64xbf16, #tpu.memory_space<vmem>>, vector<128x64xbf16>
    %cst_42 = arith.constant dense<0.000000e+00> : vector<2x64xf32>
    %89 = tpu.matmul %87, %88, %cst_42 {dimension_numbers = #tpu.dot_dimension_numbers<[1], [0], [0], [1], [0, 0, 1, 1], [], []>} : vector<2x128xbf16>, vector<128x64xbf16>, vector<2x64xf32> -> vector<2x64xf32>
    %cst_43 = arith.constant dense<0.000000e+00> : vector<64xf32>
    %90 = vector.multi_reduction <add>, %89, %cst_43 [0] : vector<2x64xf32> to vector<64xf32>
    %91 = vector.shape_cast %90 : vector<64xf32> to vector<1x64xf32>
    %cst_44 = arith.constant 2.000000e+00 : f32
    %92 = vector.broadcast %cst_44 : f32 to vector<1x64xf32>
    %93 = arith.divf %91, %92 : vector<1x64xf32>
    %94 = vector.broadcast %93 : vector<1x64xf32> to vector<2x64xf32>
    %95 = arith.subf %89, %94 : vector<2x64xf32>
    %96 = arith.mulf %95, %95 : vector<2x64xf32>
    %cst_45 = arith.constant dense<0.000000e+00> : vector<64xf32>
    %97 = vector.multi_reduction <add>, %96, %cst_45 [0] : vector<2x64xf32> to vector<64xf32>
    %98 = vector.shape_cast %97 : vector<64xf32> to vector<1x64xf32>
    %cst_46 = arith.constant 2.000000e+00 : f32
    %99 = vector.broadcast %cst_46 : f32 to vector<1x64xf32>
    %100 = arith.divf %98, %99 : vector<1x64xf32>
    %101 = vector.broadcast %93 : vector<1x64xf32> to vector<2x64xf32>
    %102 = arith.subf %89, %101 : vector<2x64xf32>
    %cst_47 = arith.constant 9.99999974E-6 : f32
    %103 = vector.broadcast %cst_47 : f32 to vector<1x64xf32>
    %104 = arith.addf %100, %103 : vector<1x64xf32>
    %105 = math.rsqrt %104 : vector<1x64xf32>
    %106 = vector.broadcast %105 : vector<1x64xf32> to vector<2x64xf32>
    %107 = arith.mulf %102, %106 : vector<2x64xf32>
    %c0_48 = arith.constant 0 : index
    %c0_49 = arith.constant 0 : index
    %108 = vector.load %arg11[%c0_48, %c0_49] : memref<1x64xf32, #tpu.memory_space<vmem>>, vector<1x64xf32>
    %109 = vector.broadcast %108 : vector<1x64xf32> to vector<2x64xf32>
    %110 = arith.mulf %107, %109 : vector<2x64xf32>
    %c0_50 = arith.constant 0 : index
    %c0_51 = arith.constant 0 : index
    %111 = vector.load %arg12[%c0_50, %c0_51] : memref<1x64xf32, #tpu.memory_space<vmem>>, vector<1x64xf32>
    %112 = vector.broadcast %111 : vector<1x64xf32> to vector<2x64xf32>
    %113 = arith.addf %110, %112 : vector<2x64xf32>
    %cst_52 = arith.constant 0.000000e+00 : f32
    %114 = vector.broadcast %cst_52 : f32 to vector<2x64xf32>
    %115 = arith.maximumf %113, %114 : vector<2x64xf32>
    %116 = arith.truncf %115 : vector<2x64xf32> to vector<2x64xbf16>
    %c0_53 = arith.constant 0 : index
    %c0_54 = arith.constant 0 : index
    %117 = vector.load %arg13[%c0_53, %c0_54] : memref<64x128xbf16, #tpu.memory_space<vmem>>, vector<64x128xbf16>
    %cst_55 = arith.constant dense<0.000000e+00> : vector<2x128xf32>
    %118 = tpu.matmul %116, %117, %cst_55 {dimension_numbers = #tpu.dot_dimension_numbers<[1], [0], [0], [1], [0, 0, 1, 1], [], []>} : vector<2x64xbf16>, vector<64x128xbf16>, vector<2x128xf32> -> vector<2x128xf32>
    %c0_56 = arith.constant 0 : index
    %c0_57 = arith.constant 0 : index
    %119 = vector.load %arg14[%c0_56, %c0_57] : memref<1x128xf32, #tpu.memory_space<vmem>>, vector<1x128xf32>
    %120 = vector.broadcast %119 : vector<1x128xf32> to vector<2x128xf32>
    %121 = arith.addf %118, %120 : vector<2x128xf32>
    %c0_58 = arith.constant 0 : index
    %c0_59 = arith.constant 0 : index
    %c0_60 = arith.constant 0 : index
    %122 = vector.load %arg16[%c0_58, %c0_59, %c0_60] : memref<1x2x128xf32, #tpu.memory_space<vmem>>, vector<1x2x128xf32>
    %123 = vector.shape_cast %122 : vector<1x2x128xf32> to vector<2x128xf32>
    %124 = vector.shape_cast %121 : vector<2x128xf32> to vector<1x2x128xf32>
    tpu.vector_store %arg16[%c0_58, %c0_59, %c0_60], %124 {strides = array<i32>} : memref<1x2x128xf32, #tpu.memory_space<vmem>>, vector<1x2x128xf32>,
    return
  }
  func.func @transform_0(%arg0: i32) -> (i32, i32, i32) {
    %c0_i32 = arith.constant 0 : i32
    %c0_i32_0 = arith.constant 0 : i32
    %c0_i32_1 = arith.constant 0 : i32
    return %arg0, %c0_i32, %c0_i32_0 : i32, i32, i32
  }
  func.func @transform_1(%arg0: i32) -> (i32, i32) {
    %c0_i32 = arith.constant 0 : i32
    %c0_i32_0 = arith.constant 0 : i32
    %c0_i32_1 = arith.constant 0 : i32
    return %c0_i32, %c0_i32_0 : i32, i32
  }
  func.func @transform_2(%arg0: i32) -> (i32, i32) {
    %c0_i32 = arith.constant 0 : i32
    %c0_i32_0 = arith.constant 0 : i32
    %c0_i32_1 = arith.constant 0 : i32
    return %c0_i32, %c0_i32_0 : i32, i32
  }
  func.func @transform_3(%arg0: i32) -> (i32, i32) {
    %c0_i32 = arith.constant 0 : i32
    %c0_i32_0 = arith.constant 0 : i32
    %c0_i32_1 = arith.constant 0 : i32
    return %c0_i32, %c0_i32_0 : i32, i32
  }
  func.func @transform_4(%arg0: i32) -> (i32, i32) {
    %c0_i32 = arith.constant 0 : i32
    %c0_i32_0 = arith.constant 0 : i32
    %c0_i32_1 = arith.constant 0 : i32
    return %c0_i32, %c0_i32_0 : i32, i32
  }
  func.func @transform_5(%arg0: i32) -> (i32, i32) {
    %c0_i32 = arith.constant 0 : i32
    %c0_i32_0 = arith.constant 0 : i32
    %c0_i32_1 = arith.constant 0 : i32
    return %c0_i32, %c0_i32_0 : i32, i32
  }
  func.func @transform_6(%arg0: i32) -> (i32, i32) {
    %c0_i32 = arith.constant 0 : i32
    %c0_i32_0 = arith.constant 0 : i32
    %c0_i32_1 = arith.constant 0 : i32
    return %c0_i32, %c0_i32_0 : i32, i32
  }
  func.func @transform_7(%arg0: i32) -> (i32, i32) {
    %c0_i32 = arith.constant 0 : i32
    %c0_i32_0 = arith.constant 0 : i32
    %c0_i32_1 = arith.constant 0 : i32
    return %c0_i32, %c0_i32_0 : i32, i32
  }
  func.func @transform_8(%arg0: i32) -> (i32, i32) {
    %c0_i32 = arith.constant 0 : i32
    %c0_i32_0 = arith.constant 0 : i32
    %c0_i32_1 = arith.constant 0 : i32
    return %c0_i32, %c0_i32_0 : i32, i32
  }
  func.func @transform_9(%arg0: i32) -> (i32, i32) {
    %c0_i32 = arith.constant 0 : i32
    %c0_i32_0 = arith.constant 0 : i32
    %c0_i32_1 = arith.constant 0 : i32
    return %c0_i32, %c0_i32_0 : i32, i32
  }
  func.func @transform_10(%arg0: i32) -> (i32, i32) {
    %c0_i32 = arith.constant 0 : i32
    %c0_i32_0 = arith.constant 0 : i32
    %c0_i32_1 = arith.constant 0 : i32
    return %c0_i32, %c0_i32_0 : i32, i32
  }
  func.func @transform_11(%arg0: i32) -> (i32, i32) {
    %c0_i32 = arith.constant 0 : i32
    %c0_i32_0 = arith.constant 0 : i32
    %c0_i32_1 = arith.constant 0 : i32
    return %c0_i32, %c0_i32_0 : i32, i32
  }
  func.func @transform_12(%arg0: i32) -> (i32, i32) {
    %c0_i32 = arith.constant 0 : i32
    %c0_i32_0 = arith.constant 0 : i32
    %c0_i32_1 = arith.constant 0 : i32
    return %c0_i32, %c0_i32_0 : i32, i32
  }
  func.func @transform_13(%arg0: i32) -> (i32, i32) {
    %c0_i32 = arith.constant 0 : i32
    %c0_i32_0 = arith.constant 0 : i32
    %c0_i32_1 = arith.constant 0 : i32
    return %c0_i32, %c0_i32_0 : i32, i32
  }
  func.func @transform_14(%arg0: i32) -> (i32, i32, i32) {
    %c0_i32 = arith.constant 0 : i32
    %c0_i32_0 = arith.constant 0 : i32
    %c0_i32_1 = arith.constant 0 : i32
    return %arg0, %c0_i32, %c0_i32_0 : i32, i32, i32
  }
  func.func @transform_15(%arg0: i32) -> (i32, i32, i32) {
    %c0_i32 = arith.constant 0 : i32
    %c0_i32_0 = arith.constant 0 : i32
    %c0_i32_1 = arith.constant 0 : i32
    return %arg0, %c0_i32, %c0_i32_0 : i32, i32, i32
  }
}

</mosaic_0001>

<bundles_post_ra>
// kernel: simsiam_forward.2
= control target key start
LH: loop header
LB: loop body
LE: loop exit
PB: predicated region body
PF: predicated region fallthrough
CT: control target
= control target key end

     0   :  { %s1296_s9 = smov 0   ;;  %s1298_s10 = smov 0   ;;  %s1391_s0 = inlined_call_operand.vmem [shape: bf16[2,2,256,128], index: 0, kind: input, shape index: {}]   ;;  %s1392_s1 = inlined_call_operand.vmem [shape: bf16[128,128], index: 1, kind: input, shape index: {}]   ;;  %s1393_s2 = inlined_call_operand.vmem [shape: f32[2,2,128], index: 2, kind: output, shape index: {}]  }
   0x1   :  { %s1300_s11 = smov 0  }
   0x2 LB: > { %s24_s12 = sadd.s32 1, %s1274_s10  ;;  %p1008_p0 = scmp.ge.s32.totalorder %s1278_s11, 1  ;;  %s1278_s11 = sphi %s1300_s11, %s12_s11   ;;  %s1274_s10 = sphi %s1298_s10, %s1395_s10   ;;  %s1270_s9 = sphi %s1296_s9, %s1394_s9  }
   0x3   : > { %p26_p1 = scmp.ge.s32.totalorder %s24_s12, 2  ;;  %p131_p2 = scmp.lt.s32.totalorder %s1278_s11, 3 }
   0x5   : > { %s1397_s12 = smov (%p26_p1, %s24_s12), 0  ;;  %p132_p3 = pnand %p1008_p0, %p131_p2 }
   0x6   : > { %v1216_v0 = vld [vmem:[%s1392_s1] sm:$0xff] (!%p132_p3)   ;;  %p157_p4 = scmp.lt.s32.totalorder (!%p132_p3), %s1270_s9, 1  ;;  %v1217_v1 = vld [vmem:[%s1392_s1 + $0x8] sm:$0xff] (!%p132_p3)   ;;  %v1218_v2 = vld [vmem:[%s1392_s1 + $0x10] sm:$0xff] (!%p132_p3)   ;;  %v1280_v40 = vmov (!%p132_p3), 0.0   ;;  %vm926_vm0 = vcmask (!%p132_p3), 1041409  }
   0x7   : > { %135 = sbr.rel (%p132_p3) target bundleno = 344 (0x158), region = 28  ;;  %1095 = vmatprep.subr.bf16.mxu0 (!%p132_p3), %v1216_v0  ;;  %1175 = vmatprep.subr.bf16.mxu1 (!%p132_p3), %v1216_v0  ;;  %v1219_v3 = vld [vmem:[%s1392_s1 + $0x18] sm:$0xff] (!%p132_p3)   ;;  %v1220_v6 = vld [vmem:[%s1392_s1 + $0x20] sm:$0xff] (!%p132_p3)   ;;  %v1221_v7 = vld [vmem:[%s1392_s1 + $0x28] sm:$0xff] (!%p132_p3)   ;;  %175 = vst [vmem:[#allocation2] sm:$0x3] (!%p132_p3), %v1280_v40 }
   0x8   : > { %1096 = vmatpush3.bf16.msra.mxu0 (!%p132_p3), %v1216_v0  ;;  %1183 = vmatpush3.bf16.msra.mxu1 (!%p132_p3), %v1216_v0  ;;  %v1222_v8 = vld [vmem:[%s1392_s1 + $0x30] sm:$0xff] (!%p132_p3)   ;;  %v1223_v9 = vld [vmem:[%s1392_s1 + $0x38] sm:$0xff] (!%p132_p3)  }
   0x9   : > { %1097 = vmatprep.subr.bf16.mxu0 (!%p132_p3), %v1217_v1  ;;  %1176 = vmatprep.subr.bf16.mxu1 (!%p132_p3), %v1217_v1 }
   0xc   : > { %1098 = vmatpush3.bf16.msra.mxu0 (!%p132_p3), %v1217_v1  ;;  %1184 = vmatpush3.bf16.msra.mxu1 (!%p132_p3), %v1217_v1 }
   0xd   : > { %1099 = vmatprep.subr.bf16.mxu0 (!%p132_p3), %v1218_v2  ;;  %1177 = vmatprep.subr.bf16.mxu1 (!%p132_p3), %v1218_v2 }
   0xe   : > { %s1399_s9 = smov (!%p157_p4, %s1270_s9), 1 }
   0xf   : > { %s1054_s19 = sshll.u32 %s1399_s9, 8  ;;  %s1011_s5 = sshll.u32 %s1399_s9, 1 }
  0x10   : > { %s1329_s22 = scalar_lea.vmem %s1391_s0, %s1054_s19  ;;  %1100 = vmatpush3.bf16.msra.mxu0 %v1218_v2  ;;  %1185 = vmatpush3.bf16.msra.mxu1 %v1218_v2  ;;  %s169_s8 = scalar_lea.vmem %s1393_s2, %s1011_s5 }
  0x11   : > { %v1224_v4 = vld [vmem:[%s1329_s22] sm:$0xff]   ;;  %1101 = vmatprep.subr.bf16.mxu0 %v1219_v3  ;;  %1178 = vmatprep.subr.bf16.mxu1 %v1219_v3  ;;  %v1226_v10 = vld [vmem:[%s1329_s22 + $0x8] sm:$0xff]   ;;  %v1228_v12 = vld [vmem:[%s1329_s22 + $0x10] sm:$0xff]  }
  0x12   : > { %v1225_v5 = vld [vmem:[%s1329_s22 + $0x80] sm:$0xff]   ;;  %1111 = vmatprep.mubr.bf16.mxu0 %v1224_v4  ;;  %v1227_v11 = vld [vmem:[%s1329_s22 + $0x88] sm:$0xff]   ;;  %v1229_v13 = vld [vmem:[%s1329_s22 + $0x90] sm:$0xff]  }
  0x13   : > { %1143 = vmatprep.mubr.bf16.mxu1 %v1225_v5  ;;  %v1230_v14 = vld [vmem:[%s1329_s22 + $0x18] sm:$0xff]   ;;  %v1232_v16 = vld [vmem:[%s1329_s22 + $0x20] sm:$0xff]   ;;  %v1234_v18 = vld [vmem:[%s1329_s22 + $0x28] sm:$0xff]  }
  0x14   : > { %1102 = vmatpush3.bf16.msra.mxu0 %v1219_v3  ;;  %1186 = vmatpush3.bf16.msra.mxu1 %v1219_v3  ;;  %v1231_v15 = vld [vmem:[%s1329_s22 + $0x98] sm:$0xff]   ;;  %v1233_v17 = vld [vmem:[%s1329_s22 + $0xa0] sm:$0xff]   ;;  %v1235_v19 = vld [vmem:[%s1329_s22 + $0xa8] sm:$0xff]  }
  0x15   : > { %1103 = vmatprep.subr.bf16.mxu0 %v1220_v6  ;;  %1179 = vmatprep.subr.bf16.mxu1 %v1220_v6  ;;  %v1236_v20 = vld [vmem:[%s1329_s22 + $0x30] sm:$0xff]   ;;  %v1238_v22 = vld [vmem:[%s1329_s22 + $0x38] sm:$0xff]   ;;  %v1240_v24 = vld [vmem:[%s1329_s22 + $0x40] sm:$0xff]  }
  0x16   : > { %v1237_v21 = vld [vmem:[%s1329_s22 + $0xb0] sm:$0xff]   ;;  %v1239_v23 = vld [vmem:[%s1329_s22 + $0xb8] sm:$0xff]   ;;  %v1241_v25 = vld [vmem:[%s1329_s22 + $0xc0] sm:$0xff]  }
  0x17   : > { %v1242_v26 = vld [vmem:[%s1329_s22 + $0x48] sm:$0xff]   ;;  %v1244_v28 = vld [vmem:[%s1329_s22 + $0x50] sm:$0xff]   ;;  %v1246_v30 = vld [vmem:[%s1329_s22 + $0x58] sm:$0xff]  }
  0x18   : > { %1104 = vmatpush3.bf16.msra.mxu0 %v1220_v6  ;;  %1187 = vmatpush3.bf16.msra.mxu1 %v1220_v6  ;;  %v1243_v27 = vld [vmem:[%s1329_s22 + $0xc8] sm:$0xff]   ;;  %v1245_v29 = vld [vmem:[%s1329_s22 + $0xd0] sm:$0xff]   ;;  %v1247_v31 = vld [vmem:[%s1329_s22 + $0xd8] sm:$0xff]  }
  0x19   : > { %1105 = vmatprep.subr.bf16.mxu0 %v1221_v7  ;;  %1180 = vmatprep.subr.bf16.mxu1 %v1221_v7  ;;  %v1248_v32 = vld [vmem:[%s1329_s22 + $0x60] sm:$0xff]   ;;  %v1250_v34 = vld [vmem:[%s1329_s22 + $0x68] sm:$0xff]   ;;  %v1252_v36 = vld [vmem:[%s1329_s22 + $0x70] sm:$0xff]  }
  0x1a   : > { %v1249_v33 = vld [vmem:[%s1329_s22 + $0xe0] sm:$0xff]   ;;  %v1251_v35 = vld [vmem:[%s1329_s22 + $0xe8] sm:$0xff]   ;;  %v1253_v37 = vld [vmem:[%s1329_s22 + $0xf0] sm:$0xff]  }
  0x1b   : > { %v1254_v38 = vld [vmem:[%s1329_s22 + $0x78] sm:$0xff]  }
  0x1c   : > { %1106 = vmatpush3.bf16.msra.mxu0 %v1221_v7  ;;  %1188 = vmatpush3.bf16.msra.mxu1 %v1221_v7  ;;  %v1255_v39 = vld [vmem:[%s1329_s22 + $0xf8] sm:$0xff]  }
  0x1d   : > { %1107 = vmatprep.subr.bf16.mxu0 %v1222_v8  ;;  %1181 = vmatprep.subr.bf16.mxu1 %v1222_v8 }
  0x20   : > { %1108 = vmatpush3.bf16.msra.mxu0 %v1222_v8  ;;  %1189 = vmatpush3.bf16.msra.mxu1 %v1222_v8 }
  0x21   : > { %1109 = vmatprep.subr.bf16.mxu0 %v1223_v9  ;;  %1182 = vmatprep.subr.bf16.mxu1 %v1223_v9 }
  0x24   : > { %1110 = vmatpush3.bf16.msra.mxu0 %v1223_v9  ;;  %1190 = vmatpush3.bf16.msra.mxu1 %v1223_v9 }
  0x27   : > { %1112 = vmatmul.mubr.bf16.vlgmr.msra.gmra.mrb[0].mxu0 %v1226_v10  ;;  %1144 = vmatmul.mubr.bf16.vlgmr.msra.gmra.mrb[0].mxu1 %v1227_v11 }
  0x28   : > { %1115 = vmatprep.mubr.bf16.mxu0 %v1228_v12  ;;  %1147 = vmatprep.mubr.bf16.mxu1 %v1229_v13 }
  0x2f   : > { %1116 = vmatmul.mubr.bf16.gmra.mrb[4].mxu0 %v1230_v14  ;;  %1148 = vmatmul.mubr.bf16.gmra.mrb[4].mxu1 %v1231_v15 }
  0x30   : > { %1119 = vmatprep.mubr.bf16.mxu0 %v1232_v16  ;;  %1151 = vmatprep.mubr.bf16.mxu1 %v1233_v17 }
  0x37   : > { %1120 = vmatmul.mubr.bf16.gmra.mrb[8].mxu0 %v1234_v18  ;;  %1152 = vmatmul.mubr.bf16.gmra.mrb[8].mxu1 %v1235_v19 }
  0x38   : > { %1123 = vmatprep.mubr.bf16.mxu0 %v1236_v20  ;;  %1155 = vmatprep.mubr.bf16.mxu1 %v1237_v21 }
  0x3f   : > { %1124 = vmatmul.mubr.bf16.gmra.mrb[12].mxu0 %v1238_v22  ;;  %1156 = vmatmul.mubr.bf16.gmra.mrb[12].mxu1 %v1239_v23 }
  0x40   : > { %1127 = vmatprep.mubr.bf16.mxu0 %v1240_v24  ;;  %1159 = vmatprep.mubr.bf16.mxu1 %v1241_v25 }
  0x47   : > { %1128 = vmatmul.mubr.bf16.gmra.mrb[16].mxu0 %v1242_v26  ;;  %1160 = vmatmul.mubr.bf16.gmra.mrb[16].mxu1 %v1243_v27 }
  0x48   : > { %1131 = vmatprep.mubr.bf16.mxu0 %v1244_v28  ;;  %1163 = vmatprep.mubr.bf16.mxu1 %v1245_v29 }
  0x4f   : > { %1132 = vmatmul.mubr.bf16.gmra.mrb[20].mxu0 %v1246_v30  ;;  %1164 = vmatmul.mubr.bf16.gmra.mrb[20].mxu1 %v1247_v31 }
  0x50   : > { %1135 = vmatprep.mubr.bf16.mxu0 %v1248_v32  ;;  %1167 = vmatprep.mubr.bf16.mxu1 %v1249_v33 }
  0x57   : > { %1136 = vmatmul.mubr.bf16.gmra.mrb[24].mxu0 %v1250_v34  ;;  %1168 = vmatmul.mubr.bf16.gmra.mrb[24].mxu1 %v1251_v35 }
  0x58   : > { %1139 = vmatprep.mubr.bf16.mxu0 %v1252_v36  ;;  %1171 = vmatprep.mubr.bf16.mxu1 %v1253_v37 }
  0x5f   : > { %1140 = vmatmul.mubr.bf16.gmra.mrb[28].mxu0 %v1254_v38  ;;  %1172 = vmatmul.mubr.bf16.gmra.mrb[28].mxu1 %v1255_v39 }
  0xfa   : > { %v1113_v41 = vpop.f32.mrb[0].mxu0  ;;  %v1145_v42 = vpop.f32.mrb[0].mxu1 }
  0xfb   : > { %v530_v43 = vpop.f32.mrb[1].mxu0  ;;  %v658_v44 = vpop.f32.mrb[1].mxu1  ;;  %v787_v53 = vmax.f32 %v1113_v41, 0.0  ;;  %v819_v54 = vmax.f32 %v1145_v42, 0.0 }
  0xfc   : > { %v1114_v45 = vpop.f32.mrb[2].mxu0  ;;  %v1146_v46 = vpop.f32.mrb[2].mxu1  ;;  %v785_v49 = vmax.f32 %v530_v43, 0.0  ;;  %v817_v50 = vmax.f32 %v658_v44, 0.0 }
  0xfd   : > { %v533_v47 = vpop.f32.mrb[3].mxu0  ;;  %v661_v48 = vpop.f32.mrb[3].mxu1  ;;  %v788_v57 = vmax.f32 %v1114_v45, 0.0  ;;  %v820_v58 = vmax.f32 %v1146_v46, 0.0 }
  0xfe   : > { %v786_v51 = vmax.f32 %v533_v47, 0.0  ;;  %v818_v52 = vmax.f32 %v661_v48, 0.0 }
 0x100   : > { %v850_v55 = vadd.f32 %v786_v51, %v785_v49  ;;  %v887_v56 = vadd.f32 %v818_v52, %v817_v50 }
 0x102   : > { %v851_v59 = vadd.f32 %v850_v55, %v787_v53  ;;  %v888_v60 = vadd.f32 %v887_v56, %v819_v54  ;;  %v1117_v61 = vpop.f32.mrb[4].mxu0  ;;  %v1149_v62 = vpop.f32.mrb[4].mxu1 }
 0x103   : > { %v546_v63 = vpop.f32.mrb[5].mxu0  ;;  %v674_v0 = vpop.f32.mrb[5].mxu1  ;;  %v791_v13 = vmax.f32 %v1117_v61, 0.0  ;;  %v823_v14 = vmax.f32 %v1149_v62, 0.0 }
 0x104   : > { %v789_v1 = vmax.f32 %v546_v63, 0.0  ;;  %v852_v2 = vadd.f32 %v851_v59, %v788_v57  ;;  %v821_v3 = vmax.f32 %v674_v0, 0.0  ;;  %v889_v4 = vadd.f32 %v888_v60, %v820_v58  ;;  %v1118_v5 = vpop.f32.mrb[6].mxu0  ;;  %v1150_v6 = vpop.f32.mrb[6].mxu1 }
 0x105   : > { %v549_v7 = vpop.f32.mrb[7].mxu0  ;;  %v677_v8 = vpop.f32.mrb[7].mxu1  ;;  %v792_v17 = vmax.f32 %v1118_v5, 0.0  ;;  %v824_v18 = vmax.f32 %v1150_v6, 0.0 }
 0x106   : > { %v853_v9 = vadd.f32 %v852_v2, %v789_v1  ;;  %v890_v10 = vadd.f32 %v889_v4, %v821_v3  ;;  %v790_v11 = vmax.f32 %v549_v7, 0.0  ;;  %v822_v12 = vmax.f32 %v677_v8, 0.0 }
 0x108   : > { %v854_v15 = vadd.f32 %v853_v9, %v790_v11  ;;  %v891_v16 = vadd.f32 %v890_v10, %v822_v12 }
 0x10a   : > { %v855_v19 = vadd.f32 %v854_v15, %v791_v13  ;;  %v892_v20 = vadd.f32 %v891_v16, %v823_v14  ;;  %v1121_v21 = vpop.f32.mrb[8].mxu0  ;;  %v1153_v22 = vpop.f32.mrb[8].mxu1 }
 0x10b   : > { %v562_v23 = vpop.f32.mrb[9].mxu0  ;;  %v690_v24 = vpop.f32.mrb[9].mxu1  ;;  %v795_v37 = vmax.f32 %v1121_v21, 0.0  ;;  %v827_v38 = vmax.f32 %v1153_v22, 0.0 }
 0x10c   : > { %v793_v25 = vmax.f32 %v562_v23, 0.0  ;;  %v856_v26 = vadd.f32 %v855_v19, %v792_v17  ;;  %v825_v27 = vmax.f32 %v690_v24, 0.0  ;;  %v893_v28 = vadd.f32 %v892_v20, %v824_v18  ;;  %v1122_v29 = vpop.f32.mrb[10].mxu0  ;;  %v1154_v30 = vpop.f32.mrb[10].mxu1 }
 0x10d   : > { %v565_v31 = vpop.f32.mrb[11].mxu0  ;;  %v693_v32 = vpop.f32.mrb[11].mxu1  ;;  %v796_v41 = vmax.f32 %v1122_v29, 0.0  ;;  %v828_v42 = vmax.f32 %v1154_v30, 0.0 }
 0x10e   : > { %v857_v33 = vadd.f32 %v856_v26, %v793_v25  ;;  %v894_v34 = vadd.f32 %v893_v28, %v825_v27  ;;  %v794_v35 = vmax.f32 %v565_v31, 0.0  ;;  %v826_v36 = vmax.f32 %v693_v32, 0.0 }
 0x110   : > { %v858_v39 = vadd.f32 %v857_v33, %v794_v35  ;;  %v895_v40 = vadd.f32 %v894_v34, %v826_v36 }
 0x112   : > { %v859_v43 = vadd.f32 %v858_v39, %v795_v37  ;;  %v896_v44 = vadd.f32 %v895_v40, %v827_v38  ;;  %v1125_v45 = vpop.f32.mrb[12].mxu0  ;;  %v1157_v46 = vpop.f32.mrb[12].mxu1 }
 0x113   : > { %v578_v47 = vpop.f32.mrb[13].mxu0  ;;  %v706_v48 = vpop.f32.mrb[13].mxu1  ;;  %v799_v61 = vmax.f32 %v1125_v45, 0.0  ;;  %v831_v62 = vmax.f32 %v1157_v46, 0.0 }
 0x114   : > { %v797_v49 = vmax.f32 %v578_v47, 0.0  ;;  %v860_v50 = vadd.f32 %v859_v43, %v796_v41  ;;  %v829_v51 = vmax.f32 %v706_v48, 0.0  ;;  %v897_v52 = vadd.f32 %v896_v44, %v828_v42  ;;  %v1126_v53 = vpop.f32.mrb[14].mxu0  ;;  %v1158_v54 = vpop.f32.mrb[14].mxu1 }
 0x115   : > { %v581_v55 = vpop.f32.mrb[15].mxu0  ;;  %v709_v56 = vpop.f32.mrb[15].mxu1  ;;  %v800_v1 = vmax.f32 %v1126_v53, 0.0  ;;  %v832_v2 = vmax.f32 %v1158_v54, 0.0 }
 0x116   : > { %v861_v57 = vadd.f32 %v860_v50, %v797_v49  ;;  %v898_v58 = vadd.f32 %v897_v52, %v829_v51  ;;  %v798_v59 = vmax.f32 %v581_v55, 0.0  ;;  %v830_v60 = vmax.f32 %v709_v56, 0.0 }
 0x118   : > { %v862_v63 = vadd.f32 %v861_v57, %v798_v59  ;;  %v899_v0 = vadd.f32 %v898_v58, %v830_v60 }
 0x11a   : > { %v863_v3 = vadd.f32 %v862_v63, %v799_v61  ;;  %v900_v4 = vadd.f32 %v899_v0, %v831_v62  ;;  %v1129_v5 = vpop.f32.mrb[16].mxu0  ;;  %v1161_v6 = vpop.f32.mrb[16].mxu1 }
 0x11b   : > { %v594_v7 = vpop.f32.mrb[17].mxu0  ;;  %v722_v8 = vpop.f32.mrb[17].mxu1  ;;  %v803_v21 = vmax.f32 %v1129_v5, 0.0  ;;  %v835_v22 = vmax.f32 %v1161_v6, 0.0 }
 0x11c   : > { %v801_v9 = vmax.f32 %v594_v7, 0.0  ;;  %v864_v10 = vadd.f32 %v863_v3, %v800_v1  ;;  %v833_v11 = vmax.f32 %v722_v8, 0.0  ;;  %v901_v12 = vadd.f32 %v900_v4, %v832_v2  ;;  %v1130_v13 = vpop.f32.mrb[18].mxu0  ;;  %v1162_v14 = vpop.f32.mrb[18].mxu1 }
 0x11d   : > { %v597_v15 = vpop.f32.mrb[19].mxu0  ;;  %v725_v16 = vpop.f32.mrb[19].mxu1  ;;  %v804_v25 = vmax.f32 %v1130_v13, 0.0  ;;  %v836_v26 = vmax.f32 %v1162_v14, 0.0 }
 0x11e   : > { %v865_v17 = vadd.f32 %v864_v10, %v801_v9  ;;  %v902_v18 = vadd.f32 %v901_v12, %v833_v11  ;;  %v802_v19 = vmax.f32 %v597_v15, 0.0  ;;  %v834_v20 = vmax.f32 %v725_v16, 0.0 }
 0x120   : > { %v866_v23 = vadd.f32 %v865_v17, %v802_v19  ;;  %v903_v24 = vadd.f32 %v902_v18, %v834_v20 }
 0x122   : > { %v867_v27 = vadd.f32 %v866_v23, %v803_v21  ;;  %v904_v28 = vadd.f32 %v903_v24, %v835_v22  ;;  %v1133_v29 = vpop.f32.mrb[20].mxu0  ;;  %v1165_v30 = vpop.f32.mrb[20].mxu1 }
 0x123   : > { %v610_v31 = vpop.f32.mrb[21].mxu0  ;;  %v738_v32 = vpop.f32.mrb[21].mxu1  ;;  %v807_v45 = vmax.f32 %v1133_v29, 0.0  ;;  %v839_v46 = vmax.f32 %v1165_v30, 0.0 }
 0x124   : > { %v805_v33 = vmax.f32 %v610_v31, 0.0  ;;  %v868_v34 = vadd.f32 %v867_v27, %v804_v25  ;;  %v837_v35 = vmax.f32 %v738_v32, 0.0  ;;  %v905_v36 = vadd.f32 %v904_v28, %v836_v26  ;;  %v1134_v37 = vpop.f32.mrb[22].mxu0  ;;  %v1166_v38 = vpop.f32.mrb[22].mxu1 }
 0x125   : > { %v613_v39 = vpop.f32.mrb[23].mxu0  ;;  %v741_v40 = vpop.f32.mrb[23].mxu1  ;;  %v808_v49 = vmax.f32 %v1134_v37, 0.0  ;;  %v840_v50 = vmax.f32 %v1166_v38, 0.0 }
 0x126   : > { %v869_v41 = vadd.f32 %v868_v34, %v805_v33  ;;  %v906_v42 = vadd.f32 %v905_v36, %v837_v35  ;;  %v806_v43 = vmax.f32 %v613_v39, 0.0  ;;  %v838_v44 = vmax.f32 %v741_v40, 0.0 }
 0x128   : > { %v870_v47 = vadd.f32 %v869_v41, %v806_v43  ;;  %v907_v48 = vadd.f32 %v906_v42, %v838_v44 }
 0x12a   : > { %v871_v51 = vadd.f32 %v870_v47, %v807_v45  ;;  %v908_v52 = vadd.f32 %v907_v48, %v839_v46  ;;  %v1137_v53 = vpop.f32.mrb[24].mxu0  ;;  %v1169_v54 = vpop.f32.mrb[24].mxu1 }
 0x12b   : > { %v626_v55 = vpop.f32.mrb[25].mxu0  ;;  %v754_v56 = vpop.f32.mrb[25].mxu1  ;;  %v811_v5 = vmax.f32 %v1137_v53, 0.0  ;;  %v843_v6 = vmax.f32 %v1169_v54, 0.0 }
 0x12c   : > { %v809_v57 = vmax.f32 %v626_v55, 0.0  ;;  %v872_v58 = vadd.f32 %v871_v51, %v808_v49  ;;  %v841_v59 = vmax.f32 %v754_v56, 0.0  ;;  %v909_v60 = vadd.f32 %v908_v52, %v840_v50  ;;  %v1138_v61 = vpop.f32.mrb[26].mxu0  ;;  %v1170_v62 = vpop.f32.mrb[26].mxu1  ;;  %v849_v50 = vld [vmem:[#allocation2] sm:$0x3] }
 0x12d   : > { %v629_v63 = vpop.f32.mrb[27].mxu0  ;;  %v757_v0 = vpop.f32.mrb[27].mxu1  ;;  %v812_v9 = vmax.f32 %v1138_v61, 0.0  ;;  %v844_v10 = vmax.f32 %v1170_v62, 0.0 }
 0x12e   : > { %v873_v1 = vadd.f32 %v872_v58, %v809_v57  ;;  %v910_v2 = vadd.f32 %v909_v60, %v841_v59  ;;  %v810_v3 = vmax.f32 %v629_v63, 0.0  ;;  %v842_v4 = vmax.f32 %v757_v0, 0.0 }
 0x130   : > { %v874_v7 = vadd.f32 %v873_v1, %v810_v3  ;;  %v911_v8 = vadd.f32 %v910_v2, %v842_v4 }
 0x132   : > { %v875_v11 = vadd.f32 %v874_v7, %v811_v5  ;;  %v912_v12 = vadd.f32 %v911_v8, %v843_v6  ;;  %v1141_v13 = vpop.f32.mrb[28].mxu0  ;;  %v1173_v14 = vpop.f32.mrb[28].mxu1 }
 0x133   : > { %v642_v15 = vpop.f32.mrb[29].mxu0  ;;  %v770_v16 = vpop.f32.mrb[29].mxu1  ;;  %v815_v29 = vmax.f32 %v1141_v13, 0.0  ;;  %v847_v30 = vmax.f32 %v1173_v14, 0.0 }
 0x134   : > { %v813_v17 = vmax.f32 %v642_v15, 0.0  ;;  %v876_v18 = vadd.f32 %v875_v11, %v812_v9  ;;  %v845_v19 = vmax.f32 %v770_v16, 0.0  ;;  %v913_v20 = vadd.f32 %v912_v12, %v844_v10  ;;  %v1142_v21 = vpop.f32.mrb[30].mxu0  ;;  %v1174_v22 = vpop.f32.mrb[30].mxu1 }
 0x135   : > { %v645_v23 = vpop.f32.mrb[31].mxu0  ;;  %v773_v24 = vpop.f32.mrb[31].mxu1  ;;  %v816_v33 = vmax.f32 %v1142_v21, 0.0  ;;  %v848_v34 = vmax.f32 %v1174_v22, 0.0 }
 0x136   : > { %v877_v25 = vadd.f32 %v876_v18, %v813_v17  ;;  %v914_v26 = vadd.f32 %v913_v20, %v845_v19  ;;  %v814_v27 = vmax.f32 %v645_v23, 0.0  ;;  %v846_v28 = vmax.f32 %v773_v24, 0.0 }
 0x138   : > { %v878_v31 = vadd.f32 %v877_v25, %v814_v27  ;;  %v915_v32 = vadd.f32 %v914_v26, %v846_v28 }
 0x13a   : > { %v879_v35 = vadd.f32 %v878_v31, %v815_v29  ;;  %v916_v36 = vadd.f32 %v915_v32, %v847_v30 }
 0x13c   : > { %v880_v37 = vadd.f32 %v879_v35, %v816_v33  ;;  %v917_v38 = vadd.f32 %v916_v36, %v848_v34 }
 0x13e   : > { %v881_v39 = vrot.slane %v880_v37, 4  ;;  %v918_v40 = vrot.slane %v917_v38, 4 }
 0x140   : > { %v882_v41 = vadd.f32 %v881_v39, %v880_v37  ;;  %v919_v42 = vadd.f32 %v918_v40, %v917_v38 }
 0x142   : > { %v883_v43 = vrot.slane %v882_v41, 2  ;;  %v920_v44 = vrot.slane %v919_v42, 2 }
 0x144   : > { %v884_v45 = vadd.f32 %v883_v43, %v882_v41  ;;  %v921_v46 = vadd.f32 %v920_v44, %v919_v42 }
 0x146   : > { %v885_v47 = vrot.slane %v884_v45, 1  ;;  %v922_v48 = vrot.slane %v921_v46, 1 }
 0x148   : > { %v886_v49 = vadd.f32 %v885_v47, %v884_v45  ;;  %v923_v51 = vadd.f32 %v922_v48, %v921_v46 }
 0x14a   : > { %v927_v52 = vsel %vm926_vm0, %v923_v51, %v886_v49 }
 0x14b   : > { %v929_v53 = vadd.f32 %v927_v52, %v849_v50 }
 0x14d   : > { %930 = vst [vmem:[#allocation2] sm:$0x3] %v929_v53 }
 0x154   : > { %v934_v54 = vld [vmem:[#allocation2] sm:$0x3] }
 0x155   : > { %v935_v55 = vmul.f32 0.00390625, %v934_v54 }
 0x157   : > { %936 = vst [vmem:[%s169_s8] sm:$0x3] %v935_v55 }
 0x158 PF: > { %s12_s11 = sadd.s32 1, %s1278_s11   ;;  %s1394_s9 = smov %s1274_s10 }
 0x159   : > { %p9_p5 = scmp.ge.s32.totalorder %s12_s11, 4   ;;  %s1395_s10 = smov %s1397_s12 }
 0x15b   :  { %11 = sbr.rel (!%p9_p5) target bundleno = 2 (0x2), region = 66 }

// kernel: simsiam_forward.3
= control target key start
LH: loop header
LB: loop body
LE: loop exit
PB: predicated region body
PF: predicated region fallthrough
CT: control target
= control target key end

     0   :  { %s1570_s18 = smov 0   ;;  %s1779_s0 = inlined_call_operand.vmem [shape: f32[2,2,128], index: 0, kind: input, shape index: {}]   ;;  %s1780_s1 = inlined_call_operand.vmem [shape: bf16[128,128], index: 1, kind: input, shape index: {}]   ;;  %s1781_s2 = inlined_call_operand.vmem [shape: f32[1,128], index: 2, kind: input, shape index: {}]   ;;  %s1782_s3 = inlined_call_operand.vmem [shape: f32[1,128], index: 3, kind: input, shape index: {}]   ;;  %s1783_s4 = inlined_call_operand.vmem [shape: bf16[128,128], index: 4, kind: input, shape index: {}]   ;;  %s1784_s5 = inlined_call_operand.vmem [shape: f32[1,128], index: 5, kind: input, shape index: {}]   ;;  %s1785_s6 = inlined_call_operand.vmem [shape: f32[1,128], index: 6, kind: input, shape index: {}]   ;;  %s1786_s7 = inlined_call_operand.vmem [shape: bf16[128,128], index: 7, kind: input, shape index: {}]   ;;  %s1787_s8 = inlined_call_operand.vmem [shape: f32[1,128], index: 8, kind: input, shape index: {}]   ;;  %s1788_s9 = inlined_call_operand.vmem [shape: bf16[128,64], index: 9, kind: input, shape index: {}]   ;;  %s1789_s10 = inlined_call_operand.vmem [shape: f32[1,64], index: 10, kind: input, shape index: {}]   ;;  %s1790_s11 = inlined_call_operand.vmem [shape: f32[1,64], index: 11, kind: input, shape index: {}]   ;;  %s1791_s12 = inlined_call_operand.vmem [shape: bf16[64,128], index: 12, kind: input, shape index: {}]   ;;  %s1792_s13 = inlined_call_operand.vmem [shape: f32[1,128], index: 13, kind: input, shape index: {}]   ;;  %s1793_s14 = inlined_call_operand.vmem [shape: f32[2,2,128], index: 14, kind: output, shape index: {0}]   ;;  %s1794_s15 = inlined_call_operand.vmem [shape: f32[2,2,128], index: 15, kind: output, shape index: {1}]  }
   0x1 LB: > { %s1238_s19 = sadd.s32 4294967295, %s1486_s18   ;;  %p1242_p0 = scmp.ge.s32.totalorder %s1486_s18, 1  ;;  %s1486_s18 = sphi %s1570_s18, %s26_s18  }
   0x2   : > { %p439_p1 = scmp.lt.s32.totalorder %s1486_s18, 3 }
   0x4   : > { %p440_p2 = pnand %p1242_p0, %p439_p1 }
   0x5   : > { %v1436_v0 = vld [vmem:[%s1780_s1] sm:$0xff] (!%p440_p2)   ;;  %v1488_v1 = vmov (!%p440_p2), 0.0   ;;  %v1437_v2 = vld [vmem:[%s1780_s1 + $0x8] sm:$0xff] (!%p440_p2)   ;;  %vm1489_vm0 = vmmov (!%p440_p2), 0   ;;  %p489_p3 = scmp.lt.s32.totalorder (!%p440_p2), %s1238_s19, 1  ;;  %v1438_v3 = vld [vmem:[%s1780_s1 + $0x10] sm:$0xff] (!%p440_p2)  }
   0x6   : > { %443 = sbr.rel (%p440_p2) target bundleno = 1325 (0x52d), region = 76  ;;  %1334 = vmatprep.subr.bf16.mxu0 (!%p440_p2), %v1488_v1  ;;  %1354 = vmatprep.subr.bf16.mxu1 (!%p440_p2), %v1488_v1  ;;  %v1439_v4 = vld [vmem:[%s1780_s1 + $0x18] sm:$0xff] (!%p440_p2)   ;;  %v1440_v5 = vld [vmem:[%s1780_s1 + $0x20] sm:$0xff] (!%p440_p2)   ;;  %v1441_v6 = vld [vmem:[%s1780_s1 + $0x28] sm:$0xff] (!%p440_p2)   ;;  %vm608_vm1 = vcmask (!%p440_p2), 1041408   ;;  %vm1030_vm2 = vcmask (!%p440_p2), 517120  }
   0x7   : > { %1335 = vmatpush3.bf16.msra.mxu0 (!%p440_p2), %v1436_v0  ;;  %1350 = vmatprep.mubr.msk.bf16.mxu0 (!%p440_p2), %vm1489_vm0, %v1488_v1  ;;  %v1442_v7 = vld [vmem:[%s1780_s1 + $0x30] sm:$0xff] (!%p440_p2)   ;;  %v1443_v8 = vld [vmem:[%s1780_s1 + $0x38] sm:$0xff] (!%p440_p2)   ;;  %v1444_v11 = vld [vmem:[%s1783_s4] sm:$0xff] (!%p440_p2)   ;;  %vm1109_vm3 = vcmask (!%p440_p2), 523264  }
   0x8   : > { %1336 = vmatprep.subr.bf16.mxu0 (!%p440_p2), %v1488_v1  ;;  %1370 = vmatprep.mubr.msk.bf16.mxu1 (!%p440_p2), %vm1489_vm0, %v1488_v1  ;;  %v1445_v12 = vld [vmem:[%s1783_s4 + $0x8] sm:$0xff] (!%p440_p2)   ;;  %v1446_v13 = vld [vmem:[%s1783_s4 + $0x10] sm:$0xff] (!%p440_p2)   ;;  %v1447_v14 = vld [vmem:[%s1783_s4 + $0x18] sm:$0xff] (!%p440_p2)  }
   0x9   : > { %1355 = vmatpush3.bf16.msra.mxu1 (!%p440_p2), %v1444_v11  ;;  %v1448_v15 = vld [vmem:[%s1783_s4 + $0x20] sm:$0xff] (!%p440_p2)   ;;  %v1449_v16 = vld [vmem:[%s1783_s4 + $0x28] sm:$0xff] (!%p440_p2)   ;;  %v1450_v17 = vld [vmem:[%s1783_s4 + $0x30] sm:$0xff] (!%p440_p2)  }
   0xa   : > { %1356 = vmatprep.subr.bf16.mxu1 (!%p440_p2), %v1488_v1  ;;  %v1451_v18 = vld [vmem:[%s1783_s4 + $0x38] sm:$0xff] (!%p440_p2)   ;;  %v1254_v43 = vld [vmem:[%s1781_s2] ss:$0 sm:$0xff] (!%p440_p2)  ;;  %v1453_v51 = vld [vmem:[%s1786_s7 + $0x8] sm:$0xff] (!%p440_p2)  }
   0xb   : > { %1337 = vmatpush3.bf16.msra.mxu0 (!%p440_p2), %v1437_v2  ;;  %v1255_v45 = vld [vmem:[%s1782_s3] ss:$0 sm:$0xff] (!%p440_p2)  ;;  %v1454_v52 = vld [vmem:[%s1786_s7 + $0x10] sm:$0xff] (!%p440_p2)   ;;  %v1455_v53 = vld [vmem:[%s1786_s7 + $0x18] sm:$0xff] (!%p440_p2)  }
   0xc   : > { %1338 = vmatprep.subr.bf16.mxu0 (!%p440_p2), %v1488_v1  ;;  %v1452_v50 = vld [vmem:[%s1786_s7] sm:$0xff] (!%p440_p2)   ;;  %v1457_v55 = vld [vmem:[%s1786_s7 + $0x28] sm:$0xff] (!%p440_p2)   ;;  %v1458_v56 = vld [vmem:[%s1786_s7 + $0x30] sm:$0xff] (!%p440_p2)  }
   0xd   : > { %s1796_s19 = smov (!%p489_p3, %s1238_s19), 1  ;;  %1357 = vmatpush3.bf16.msra.mxu1 %v1445_v12  ;;  %v1456_v54 = vld [vmem:[%s1786_s7 + $0x20] sm:$0xff]   ;;  %v1459_v57 = vld [vmem:[%s1786_s7 + $0x38] sm:$0xff]  }
   0xe   : > { %s1598_s28 = sshll.u32 %s1796_s19, 1  ;;  %1358 = vmatprep.subr.bf16.mxu1 %v1488_v1 }
   0xf   : > { %1339 = vmatpush3.bf16.msra.mxu0 %v1438_v3  ;;  %s492_s23 = scalar_lea.vmem %s1779_s0, %s1598_s28  ;;  %s496_s21 = scalar_lea.vmem %s1793_s14, %s1598_s28 }
  0x10   : > { %1340 = vmatprep.subr.bf16.mxu0 %v1488_v1  ;;  %v502_v9 = vld [vmem:[%s492_s23] sm:$0x3]  ;;  %s500_s25 = scalar_lea.vmem %s1794_s15, %s1598_s28 }
  0x11   : > { %v503_v10 = vpack.c.bf16 %v502_v9, %v502_v9  ;;  %1359 = vmatpush3.bf16.msra.mxu1 %v1446_v13 }
  0x12   : > { %1360 = vmatprep.subr.bf16.mxu1 %v1488_v1 }
  0x13   : > { %1341 = vmatpush3.bf16.msra.mxu0 %v1439_v4 }
  0x14   : > { %1342 = vmatprep.subr.bf16.mxu0 %v1488_v1 }
  0x15   : > { %1361 = vmatpush3.bf16.msra.mxu1 %v1447_v14 }
  0x16   : > { %1362 = vmatprep.subr.bf16.mxu1 %v1488_v1 }
  0x17   : > { %1343 = vmatpush3.bf16.msra.mxu0 %v1440_v5 }
  0x18   : > { %1344 = vmatprep.subr.bf16.mxu0 %v1488_v1 }
  0x19   : > { %1363 = vmatpush3.bf16.msra.mxu1 %v1448_v15 }
  0x1a   : > { %1364 = vmatprep.subr.bf16.mxu1 %v1488_v1 }
  0x1b   : > { %1345 = vmatpush3.bf16.msra.mxu0 %v1441_v6 }
  0x1c   : > { %1346 = vmatprep.subr.bf16.mxu0 %v1488_v1 }
  0x1d   : > { %1365 = vmatpush3.bf16.msra.mxu1 %v1449_v16 }
  0x1e   : > { %1366 = vmatprep.subr.bf16.mxu1 %v1488_v1 }
  0x1f   : > { %1347 = vmatpush3.bf16.msra.mxu0 %v1442_v7 }
  0x20   : > { %1348 = vmatprep.subr.bf16.mxu0 %v1488_v1 }
  0x21   : > { %1367 = vmatpush3.bf16.msra.mxu1 %v1450_v17 }
  0x22   : > { %1368 = vmatprep.subr.bf16.mxu1 %v1488_v1 }
  0x23   : > { %1349 = vmatpush3.bf16.msra.mxu0 %v1443_v8 }
  0x24   : > { %1374 = vmatprep.subr.bf16.mxu0 %v1488_v1 }
  0x25   : > { %1369 = vmatpush3.bf16.msra.mxu1 %v1451_v18 }
  0x26   : > { %1351 = vmatmul.mubr.bf16.vlgmr.msra.gmra.mrb[0].mxu0 %v503_v10  ;;  %1394 = vmatprep.subr.bf16.mxu1 %v1488_v1 }
  0x27   : > { %1390 = vmatprep.mubr.msk.bf16.mxu0 %vm1489_vm0, %v1488_v1  ;;  %1375 = vmatpush3.bf16.msra.mxu0 %v1452_v50 }
  0x28   : > { %1376 = vmatprep.subr.bf16.mxu0 %v1488_v1 }
  0x2b   : > { %1377 = vmatpush3.bf16.msra.mxu0 %v1453_v51 }
  0x2c   : > { %1378 = vmatprep.subr.bf16.mxu0 %v1488_v1 }
  0x2f   : > { %1379 = vmatpush3.bf16.msra.mxu0 %v1454_v52 }
  0x30   : > { %1380 = vmatprep.subr.bf16.mxu0 %v1488_v1 }
  0x33   : > { %1381 = vmatpush3.bf16.msra.mxu0 %v1455_v53 }
  0x34   : > { %1382 = vmatprep.subr.bf16.mxu0 %v1488_v1 }
  0x37   : > { %1383 = vmatpush3.bf16.msra.mxu0 %v1456_v54 }
  0x38   : > { %1384 = vmatprep.subr.bf16.mxu0 %v1488_v1 }
  0x3b   : > { %1385 = vmatpush3.bf16.msra.mxu0 %v1457_v55 }
  0x3c   : > { %1386 = vmatprep.subr.bf16.mxu0 %v1488_v1 }
  0x3f   : > { %1387 = vmatpush3.bf16.msra.mxu0 %v1458_v56 }
  0x40   : > { %1388 = vmatprep.subr.bf16.mxu0 %v1488_v1 }
  0x43   : > { %1389 = vmatpush3.bf16.msra.mxu0 %v1459_v57 }
  0x44   : > { %1414 = vmatprep.subr.bf16.mxu0 %v1488_v1 }
  0xf9   : > { %v602_v19 = vpop.f32.mrb[0].mxu0 }
  0xfa   : > { %v609_v20 = vsel %vm608_vm1, %v602_v19, 0.0  ;;  %v1352_v21 = vpop.f32.mrb[1].mxu0 }
  0xfb   : > { %v610_v22 = vrot.slane %v609_v20, 4  ;;  %v605_v23 = vpop.f32.mrb[2].mxu0  ;;  %v1265_v21 = vld [vmem:[%s1785_s6] ss:$0 sm:$0xff] }
  0xfc   : > { %v1353_v24 = vpop.f32.mrb[3].mxu0 }
  0xfd   : > { %v611_v25 = vadd.f32 %v610_v22, %v609_v20 }
  0xff   : > { %v612_v26 = vrot.slane %v611_v25, 2 }
 0x101   : > { %v613_v27 = vadd.f32 %v612_v26, %v611_v25  ;;  %v1460_v26 = vld [vmem:[%s1788_s9] sm:$0xff]  }
 0x103   : > { %v614_v28 = vrot.slane %v613_v27, 1 }
 0x105   : > { %v615_v29 = vadd.f32 %v614_v28, %v613_v27  ;;  %v1461_v27 = vld [vmem:[%s1788_s9 + $0x8] sm:$0xff]   ;;  %v1462_v28 = vld [vmem:[%s1788_s9 + $0x10] sm:$0xff]  }
 0x107   : > { %v617_v30 = vmul.f32 0.5, %v615_v29  ;;  %v1463_v29 = vld [vmem:[%s1788_s9 + $0x18] sm:$0xff]  }
 0x109   : > { %v618_v31 = vsub.f32 %v602_v19, %v617_v30  ;;  %v1264_v19 = vld [vmem:[%s1784_s5] ss:$0 sm:$0xff] }
 0x10a   : > { %v1464_v30 = vld [vmem:[%s1788_s9 + $0x20] sm:$0xff]  }
 0x10b   : > { %v619_v32 = vmul.f32 %v618_v31, %v618_v31 }
 0x10d   : > { %v620_v33 = vsel %vm608_vm1, %v619_v32, 0.0  ;;  %v1466_v32 = vld [vmem:[%s1788_s9 + $0x30] sm:$0xff]  }
 0x10e   : > { %v621_v34 = vrot.slane %v620_v33, 4 }
 0x110   : > { %v622_v35 = vadd.f32 %v621_v34, %v620_v33  ;;  %v1467_v33 = vld [vmem:[%s1788_s9 + $0x38] sm:$0xff]   ;;  %v1266_v34 = vld [vmem:[%s1787_s8] ss:$0 sm:$0xff] }
 0x112   : > { %v623_v36 = vrot.slane %v622_v35, 2 }
 0x114   : > { %v624_v37 = vadd.f32 %v623_v36, %v622_v35 }
 0x116   : > { %v625_v38 = vrot.slane %v624_v37, 1 }
 0x118   : > { %v626_v39 = vadd.f32 %v625_v38, %v624_v37 }
 0x11a   : > { %v627_v40 = vmul.f32 0.5, %v626_v39 }
 0x11c   : > { %v628_v41 = vadd.f32 1e-05, %v627_v40 }
 0x11e   : > { %1472 = vrsqrt.f32 %v628_v41 }
 0x128   : > { %v1473_v42 = vpop.eup %1472 }
 0x129   : > { %v630_v44 = vmul.f32 %v1473_v42, %v618_v31  ;;  %v1465_v31 = vld [vmem:[%s1788_s9 + $0x28] sm:$0xff]  }
 0x12b   : > { %v638_v46 = vmul.f32 %v1254_v43, %v630_v44 }
 0x12d   : > { %v646_v47 = vadd.f32 %v1255_v45, %v638_v46 }
 0x12f   : > { %v647_v48 = vmax.f32 %v646_v47, 0.0 }
 0x131   : > { %v648_v49 = vpack.c.bf16 %v647_v48, %v647_v48 }
 0x133   : > { %1371 = vmatmul.mubr.bf16.vlgmr.msra.gmra.mrb[0].mxu1 %v648_v49 }
 0x134   : > { %1410 = vmatprep.mubr.msk.bf16.mxu1 %vm1489_vm0, %v1488_v1  ;;  %1395 = vmatpush3.bf16.msra.mxu1 %v1460_v26  ;;  %v1283_v26 = vld [vmem:[%s1789_s10] ss:$0 sm:$0xff] }
 0x135   : > { %1396 = vmatprep.subr.bf16.mxu1 %v1488_v1 }
 0x138   : > { %1397 = vmatpush3.bf16.msra.mxu1 %v1461_v27 }
 0x139   : > { %1398 = vmatprep.subr.bf16.mxu1 %v1488_v1 }
 0x13c   : > { %1399 = vmatpush3.bf16.msra.mxu1 %v1462_v28  ;;  %v1284_v28 = vld [vmem:[%s1790_s11] ss:$0 sm:$0xff] }
 0x13d   : > { %1400 = vmatprep.subr.bf16.mxu1 %v1488_v1 }
 0x140   : > { %1401 = vmatpush3.bf16.msra.mxu1 %v1463_v29 }
 0x141   : > { %1402 = vmatprep.subr.bf16.mxu1 %v1488_v1 }
 0x144   : > { %1403 = vmatpush3.bf16.msra.mxu1 %v1464_v30 }
 0x145   : > { %1404 = vmatprep.subr.bf16.mxu1 %v1488_v1 }
 0x148   : > { %1405 = vmatpush3.bf16.msra.mxu1 %v1465_v31 }
 0x149   : > { %1406 = vmatprep.subr.bf16.mxu1 %v1488_v1 }
 0x14c   : > { %1407 = vmatpush3.bf16.msra.mxu1 %v1466_v32 }
 0x14d   : > { %1408 = vmatprep.subr.bf16.mxu1 %v1488_v1 }
 0x150   : > { %1409 = vmatpush3.bf16.msra.mxu1 %v1467_v33  ;;  %v1285_v33 = vld [vmem:[%s1792_s13] ss:$0 sm:$0xff] }
 0x206   : > { %v747_v58 = vpop.f32.mrb[0].mxu1 }
 0x207   : > { %v753_v59 = vsel %vm608_vm1, %v747_v58, 0.0  ;;  %v1372_v60 = vpop.f32.mrb[1].mxu1 }
 0x208   : > { %v754_v61 = vrot.slane %v753_v59, 4  ;;  %v750_v62 = vpop.f32.mrb[2].mxu1 }
 0x209   : > { %v1373_v63 = vpop.f32.mrb[3].mxu1  ;;  %v1468_v62 = vld [vmem:[%s1791_s12] sm:$0xff]  }
 0x20a   : > { %v755_v0 = vadd.f32 %v754_v61, %v753_v59  ;;  %v1469_v63 = vld [vmem:[%s1791_s12 + $0x8] sm:$0xff]  }
 0x20c   : > { %v756_v2 = vrot.slane %v755_v0, 2 }
 0x20e   : > { %v757_v3 = vadd.f32 %v756_v2, %v755_v0  ;;  %v1470_v0 = vld [vmem:[%s1791_s12 + $0x10] sm:$0xff]   ;;  %v1471_v2 = vld [vmem:[%s1791_s12 + $0x18] sm:$0xff]  }
 0x210   : > { %v758_v4 = vrot.slane %v757_v3, 1 }
 0x212   : > { %v759_v5 = vadd.f32 %v758_v4, %v757_v3 }
 0x214   : > { %v760_v6 = vmul.f32 0.5, %v759_v5 }
 0x216   : > { %v761_v7 = vsub.f32 %v747_v58, %v760_v6 }
 0x218   : > { %v762_v8 = vmul.f32 %v761_v7, %v761_v7 }
 0x21a   : > { %v763_v9 = vsel %vm608_vm1, %v762_v8, 0.0 }
 0x21b   : > { %v764_v10 = vrot.slane %v763_v9, 4 }
 0x21d   : > { %v765_v11 = vadd.f32 %v764_v10, %v763_v9 }
 0x21f   : > { %v766_v12 = vrot.slane %v765_v11, 2 }
 0x221   : > { %v767_v13 = vadd.f32 %v766_v12, %v765_v11 }
 0x223   : > { %v768_v14 = vrot.slane %v767_v13, 1 }
 0x225   : > { %v769_v15 = vadd.f32 %v768_v14, %v767_v13 }
 0x227   : > { %v770_v16 = vmul.f32 0.5, %v769_v15 }
 0x229   : > { %v771_v17 = vadd.f32 1e-05, %v770_v16 }
 0x22b   : > { %1474 = vrsqrt.f32 %v771_v17 }
 0x235   : > { %v1475_v18 = vpop.eup %1474 }
 0x236   : > { %v773_v20 = vmul.f32 %v1475_v18, %v761_v7 }
 0x238   : > { %v781_v22 = vmul.f32 %v1264_v19, %v773_v20 }
 0x23a   : > { %v789_v23 = vadd.f32 %v1265_v21, %v781_v22 }
 0x23c   : > { %v790_v24 = vmax.f32 %v789_v23, 0.0 }
 0x23e   : > { %v791_v25 = vpack.c.bf16 %v790_v24, %v790_v24 }
 0x240   : > { %1391 = vmatmul.mubr.bf16.vlgmr.msra.gmra.mrb[4].mxu0 %v791_v25 }
 0x241   : > { %1422 = vmatprep.mubr.msk.bf16.mxu0 %vm1489_vm0, %v1488_v1  ;;  %1415 = vmatpush3.bf16.msra.mxu0 %v1468_v62 }
 0x242   : > { %1416 = vmatprep.subr.bf16.mxu0 %v1488_v1 }
 0x245   : > { %1417 = vmatpush3.bf16.msra.mxu0 %v1469_v63 }
 0x246   : > { %1418 = vmatprep.subr.bf16.mxu0 %v1488_v1 }
 0x249   : > { %1419 = vmatpush3.bf16.msra.mxu0 %v1470_v0 }
 0x24a   : > { %1420 = vmatprep.subr.bf16.mxu0 %v1488_v1 }
 0x24d   : > { %1421 = vmatpush3.bf16.msra.mxu0 %v1471_v2 }
 0x313   : > { %v897_v35 = vpop.f32.mrb[4].mxu0 }
 0x314   : > { %v898_v36 = vadd.f32 %v1266_v34, %v897_v35  ;;  %v1392_v37 = vpop.f32.mrb[5].mxu0 }
 0x315   : > { %v900_v38 = vpop.f32.mrb[6].mxu0 }
 0x316   : > { %v903_v39 = vsel %vm608_vm1, %v898_v36, 0.0  ;;  %v1393_v40 = vpop.f32.mrb[7].mxu0 }
 0x317   : > { %v904_v41 = vrot.slane %v903_v39, 4 }
 0x319   : > { %v905_v42 = vadd.f32 %v904_v41, %v903_v39 }
 0x31b   : > { %v906_v43 = vrot.slane %v905_v42, 2 }
 0x31d   : > { %v907_v44 = vadd.f32 %v906_v43, %v905_v42 }
 0x31f   : > { %v908_v45 = vrot.slane %v907_v44, 1 }
 0x321   : > { %v909_v46 = vadd.f32 %v908_v45, %v907_v44 }
 0x323   : > { %v910_v47 = vmul.f32 0.5, %v909_v46 }
 0x325   : > { %v911_v48 = vsub.f32 %v898_v36, %v910_v47 }
 0x327   : > { %v912_v49 = vmul.f32 %v911_v48, %v911_v48 }
 0x329   : > { %v913_v50 = vsel %vm608_vm1, %v912_v49, 0.0 }
 0x32a   : > { %v914_v51 = vrot.slane %v913_v50, 4 }
 0x32c   : > { %v915_v52 = vadd.f32 %v914_v51, %v913_v50 }
 0x32e   : > { %v916_v53 = vrot.slane %v915_v52, 2 }
 0x330   : > { %v917_v54 = vadd.f32 %v916_v53, %v915_v52 }
 0x332   : > { %v918_v55 = vrot.slane %v917_v54, 1 }
 0x334   : > { %v919_v56 = vadd.f32 %v918_v55, %v917_v54 }
 0x336   : > { %v920_v57 = vmul.f32 0.5, %v919_v56 }
 0x338   : > { %v921_v58 = vadd.f32 1e-05, %v920_v57 }
 0x33a   : > { %1476 = vrsqrt.f32 %v921_v58 }
 0x344   : > { %v1477_v59 = vpop.eup %1476 }
 0x345   : > { %v923_v60 = vmul.f32 %v1477_v59, %v911_v48 }
 0x347   : > { %924 = vst [vmem:[%s496_s21] sm:$0x3] %v923_v60  ;;  %v925_v61 = vpack.c.bf16 %v923_v60, %v923_v60 }
 0x349   : > { %1411 = vmatmul.mubr.bf16.vlgmr.msra.gmra.mrb[4].mxu1 %v925_v61 }
 0x41c   : > { %v1024_v3 = vpop.f32.mrb[4].mxu1 }
 0x41d   : > { %v1031_v4 = vsel %vm1030_vm2, %v1024_v3, 0.0  ;;  %v1412_v5 = vpop.f32.mrb[5].mxu1 }
 0x41e   : > { %v1032_v6 = vrot.slane %v1031_v4, 4  ;;  %v1027_v7 = vpop.f32.mrb[6].mxu1 }
 0x41f   : > { %v1413_v8 = vpop.f32.mrb[7].mxu1 }
 0x420   : > { %v1033_v9 = vadd.f32 %v1032_v6, %v1031_v4 }
 0x422   : > { %v1034_v10 = vrot.slane %v1033_v9, 2 }
 0x424   : > { %v1035_v11 = vadd.f32 %v1034_v10, %v1033_v9 }
 0x426   : > { %v1036_v12 = vrot.slane %v1035_v11, 1 }
 0x428   : > { %v1037_v13 = vadd.f32 %v1036_v12, %v1035_v11 }
 0x42a   : > { %v1038_v14 = vmul.f32 0.5, %v1037_v13 }
 0x42c   : > { %v1039_v15 = vsub.f32 %v1024_v3, %v1038_v14 }
 0x42e   : > { %v1040_v1 = vmul.f32 %v1039_v15, %v1039_v15 }
 0x430   : > { %v1041_v16 = vsel %vm1030_vm2, %v1040_v1, 0.0 }
 0x431   : > { %v1042_v17 = vrot.slane %v1041_v16, 4 }
 0x433   : > { %v1043_v18 = vadd.f32 %v1042_v17, %v1041_v16 }
 0x435   : > { %v1044_v19 = vrot.slane %v1043_v18, 2 }
 0x437   : > { %v1045_v20 = vadd.f32 %v1044_v19, %v1043_v18 }
 0x439   : > { %v1046_v21 = vrot.slane %v1045_v20, 1 }
 0x43b   : > { %v1047_v22 = vadd.f32 %v1046_v21, %v1045_v20 }
 0x43d   : > { %v1048_v23 = vmul.f32 0.5, %v1047_v22 }
 0x43f   : > { %v1049_v24 = vadd.f32 1e-05, %v1048_v23 }
 0x441   : > { %1478 = vrsqrt.f32 %v1049_v24 }
 0x44b   : > { %v1479_v25 = vpop.eup %1478 }
 0x44c   : > { %v1051_v27 = vmul.f32 %v1479_v25, %v1039_v15 }
 0x44e   : > { %v1059_v29 = vmul.f32 %v1283_v26, %v1051_v27 }
 0x450   : > { %v1067_v30 = vadd.f32 %v1284_v28, %v1059_v29 }
 0x452   : > { %v1068_v31 = vmax.f32 %v1067_v30, 0.0 }
 0x454   : > { %v1069_v32 = vpack.c.bf16 %v1068_v31, %v1068_v31 }
 0x456   : > { %1423 = vmatmul.mubr.msk.bf16.vlgmr.msra.gmra.mrb[8].mxu0 %vm1109_vm3, %v1069_v32 }
 0x529   : > { %v1147_v34 = vpop.f32.mrb[8].mxu0 }
 0x52a   : > { %v1148_v35 = vadd.f32 %v1285_v33, %v1147_v34  ;;  %v1424_v36 = vpop.f32.mrb[9].mxu0 }
 0x52b   : > { %v1150_v37 = vpop.f32.mrb[10].mxu0 }
 0x52c   : > { %1153 = vst [vmem:[%s500_s25] sm:$0x3] %v1148_v35  ;;  %v1425_v38 = vpop.f32.mrb[11].mxu0 }
 0x52d PF: > { %s26_s18 = sadd.s32 1, %s1486_s18  }
 0x52e   : > { %p23_p4 = scmp.ge.s32.totalorder %s26_s18, 4  }
 0x530   :  { %25 = sbr.rel (!%p23_p4) target bundleno = 1 (0x1), region = 118 }

</bundles_post_ra>
